<compile_context>
chip_gen: v7x
topology: tpu7x:2x2x1
jax: 0.10.0
libtpu: 0.0.40
codegen_flags: <defaults>
</compile_context>

<pallas_src>
import jax
import jax.numpy as jnp
import numpy as np
from jax import lax
from jax.experimental import pallas as pl
from jax.experimental.pallas import tpu as pltpu


def encoder_lstm_kernel(tok_ref, emb_ref, wih_ref, whh_ref, b_ref,
                        h_out_ref, c_out_ref,
                        gx_scr, h_scr, c_scr):
    """Fused embedding lookup + single-layer LSTM; writes only final (h, c)."""
    T = gx_scr.shape[0]
    B = gx_scr.shape[1]
    H = whh_ref.shape[0]
    TB = T * B
    vocab, E = emb_ref.shape

    # ---- fused embedding lookup (exact, VPU select-accumulate) --------------
    # tokens arrive as [T*B, 1] int32.  For the small vocabulary this encoder
    # uses, an unrolled select-accumulate over vocab rows is exact f32 and
    # avoids materializing `embedded` in HBM.  For large vocabularies this
    # would become a manual DMA row gather instead.
    emb = emb_ref[...]                                   # [V, E]
    tok = tok_ref[...]                                   # [T*B, 1] int32
    x = jnp.zeros((TB, E), jnp.float32)
    for v in range(vocab):                               # static unroll, vocab small
        sel = (tok == v).astype(jnp.float32)             # [T*B, 1]
        x = x + sel * emb[v:v + 1, :]                    # broadcast -> [T*B, E]

    # ---- hoisted input projection: one batched matmul + folded bias ---------
    # gates_x = x @ W_ih^T + (b_ih + b_hh); [T*B, 4H] is lane-dense (4H = 128).
    gx_flat = (jnp.dot(x, wih_ref[...], preferred_element_type=jnp.float32)
               + b_ref[...])                             # [T*B, 4H]
    # Stage per-timestep slabs in a [T, B, 4H] scratch so the recurrence only
    # needs a cheap dynamic leading-axis load per step.  Static fill loop.
    for t in range(T):
        gx_scr[t] = gx_flat[t * B:(t + 1) * B, :]

    whh = whh_ref[...]                                   # [H, 4H]

    # Lane-index mask selecting the g-gate region (PyTorch gate order i,f,g,o),
    # hoisted out of the recurrence (JAX does not CSE broadcast_in_dim).
    lane = lax.broadcasted_iota(jnp.int32, (B, 4 * H), 1)
    g_mask = (lane >= 2 * H) & (lane < 3 * H)

    h_scr[...] = jnp.zeros_like(h_scr)
    c_scr[...] = jnp.zeros_like(c_scr)

    def step(t, carry):
        h = h_scr[...]                                   # [B, H]
        c = c_scr[...]                                   # [B, H]
        # Only the recurrent matmul + elementwise update sit on the serial path.
        gates = gx_scr[t] + jnp.dot(h, whh,
                                    preferred_element_type=jnp.float32)  # [B,4H]
        # Two full-vreg EUP passes + one select instead of 4 narrow gate slices.
        act = jnp.where(g_mask, jnp.tanh(gates), jax.nn.sigmoid(gates))
        i_g = act[:, 0 * H:1 * H]
        f_g = act[:, 1 * H:2 * H]
        g_g = act[:, 2 * H:3 * H]
        o_g = act[:, 3 * H:4 * H]
        c_new = f_g * c + i_g * g_g
        h_new = o_g * jnp.tanh(c_new)
        h_scr[...] = h_new
        c_scr[...] = c_new
        return carry

    # Full unroll is fine while T is small and static; use a bounded unroll
    # (4-8) or a time-chunk grid axis for long sequences.
    lax.fori_loop(0, T, step, 0, unroll=True)

    h_out_ref[...] = h_scr[...]
    c_out_ref[...] = c_scr[...]


def prepare_lstm_params(w_ih, w_hh, b_ih, b_hh):
    """Transpose/fold the static LSTM weights once, outside the jitted forward."""
    return w_ih.T, w_hh.T, (b_ih + b_hh)[None, :]


@jax.jit
def encoder_forward(tokens, emb_table, wih_t, whh_t, bias):
    """Mirrors Encoder.forward: returns (hidden_state, cell_state), each [1, B, H]."""
    T, B = tokens.shape
    VOCAB, E = emb_table.shape
    H = whh_t.shape[0]

    tok2d = tokens.reshape(T * B, 1).astype(jnp.int32)

    h_n, c_n = pl.pallas_call(
        encoder_lstm_kernel,
        out_shape=(jax.ShapeDtypeStruct((B, H), jnp.float32),
                   jax.ShapeDtypeStruct((B, H), jnp.float32)),
        grid=(1,),
        in_specs=[
            pl.BlockSpec((T * B, 1), lambda i: (0, 0)),      # tokens
            pl.BlockSpec((VOCAB, E), lambda i: (0, 0)),      # embedding table
            pl.BlockSpec((E, 4 * H), lambda i: (0, 0)),      # W_ih^T
            pl.BlockSpec((H, 4 * H), lambda i: (0, 0)),      # W_hh^T
            pl.BlockSpec((1, 4 * H), lambda i: (0, 0)),      # b_ih + b_hh
        ],
        out_specs=(
            pl.BlockSpec((B, H), lambda i: (0, 0)),
            pl.BlockSpec((B, H), lambda i: (0, 0)),
        ),
        scratch_shapes=[
            pltpu.VMEM((T, B, 4 * H), jnp.float32),   # hoisted gates_x
            pltpu.VMEM((B, H), jnp.float32),          # h carry
            pltpu.VMEM((B, H), jnp.float32),          # c carry
        ],
        compiler_params=pltpu.CompilerParams(
            dimension_semantics=("arbitrary",)),
    )(tok2d, emb_table, wih_t, whh_t, bias)

    # PyTorch LSTM returns states with a leading num_layers(=1) axis.
    return h_n[None], c_n[None]


def lstm_reference(embedded, w_ih, w_hh, b_ih, b_hh):
    """Pure-JAX reference matching torch.nn.LSTM (num_layers=1)."""
    T, B, E = embedded.shape
    H = w_hh.shape[1]

    def step(carry, x_t):
        h, c = carry
        gates = x_t @ w_ih.T + b_ih + h @ w_hh.T + b_hh
        i_g = jax.nn.sigmoid(gates[:, 0 * H:1 * H])
        f_g = jax.nn.sigmoid(gates[:, 1 * H:2 * H])
        g_g = jnp.tanh(gates[:, 2 * H:3 * H])
        o_g = jax.nn.sigmoid(gates[:, 3 * H:4 * H])
        c_new = f_g * c + i_g * g_g
        h_new = o_g * jnp.tanh(c_new)
        return (h_new, c_new), None

    init = (jnp.zeros((B, H), jnp.float32), jnp.zeros((B, H), jnp.float32))
    (h_n, c_n), _ = lax.scan(step, init, embedded)
    return h_n[None], c_n[None]


if __name__ == "__main__":
    # Small, deterministic setup consistent with the module's forward:
    #   embeddings_dim E = 32, hidden_Dimention H = 32, Num_layer = 1
    #   tokens: [seq_len T = 8, batch B = 2]
    T, B, E, H, VOCAB = 8, 2, 32, 32, 16

    key = jax.random.PRNGKey(0)
    k_emb, k_wih, k_whh, k_bih, k_bhh, k_tok = jax.random.split(key, 6)

    # Frozen "pretrained" embedding table (synthetic, deterministic).
    emb_table = jax.random.normal(k_emb, (VOCAB, E), jnp.float32)

    # PyTorch LSTM init: uniform(-1/sqrt(H), 1/sqrt(H)); gate order i, f, g, o.
    bound = 1.0 / np.sqrt(H)
    w_ih = jax.random.uniform(k_wih, (4 * H, E), jnp.float32, -bound, bound)
    w_hh = jax.random.uniform(k_whh, (4 * H, H), jnp.float32, -bound, bound)
    b_ih = jax.random.uniform(k_bih, (4 * H,), jnp.float32, -bound, bound)
    b_hh = jax.random.uniform(k_bhh, (4 * H,), jnp.float32, -bound, bound)

    tokens = jax.random.randint(k_tok, (T, B), 0, VOCAB, jnp.int32)

    # NOTE: nn.LSTM(dropout=0.2) with num_layers=1 applies no dropout in PyTorch,
    # so the forward pass is deterministic; nothing to emulate here.

    wih_t, whh_t, bias = prepare_lstm_params(w_ih, w_hh, b_ih, b_hh)
    hidden_state, cell_state = encoder_forward(
        tokens, emb_table, wih_t, whh_t, bias)
    jax.block_until_ready((hidden_state, cell_state))

    # Cross-check against a pure-JAX reference of the same math.
    embedded = jnp.take(emb_table, tokens, axis=0)
    h_ref, c_ref = lstm_reference(embedded, w_ih, w_hh, b_ih, b_hh)
    np.testing.assert_allclose(np.asarray(hidden_state), np.asarray(h_ref),
                               rtol=1e-5, atol=1e-5)
    np.testing.assert_allclose(np.asarray(cell_state), np.asarray(c_ref),
                               rtol=1e-5, atol=1e-5)

    assert hidden_state.shape == (1, B, H)
    assert cell_state.shape == (1, B, H)
    print("KERNEL_OK")
</pallas_src>

<mosaic_0001>
module attributes {stable_mosaic.version = 11 : i64} {
  func.func @encoder_lstm_kernel(%arg0: i32, %arg1: memref<16x1xi32, #tpu.memory_space<vmem>>, %arg2: memref<16x32xf32, #tpu.memory_space<vmem>>, %arg3: memref<32x128xf32, #tpu.memory_space<vmem>>, %arg4: memref<32x128xf32, #tpu.memory_space<vmem>>, %arg5: memref<1x128xf32, #tpu.memory_space<vmem>>, %arg6: memref<2x32xf32, #tpu.memory_space<vmem>>, %arg7: memref<2x32xf32, #tpu.memory_space<vmem>>, %arg8: memref<8x2x128xf32, #tpu.memory_space<vmem>>, %arg9: memref<2x32xf32, #tpu.memory_space<vmem>>, %arg10: memref<2x32xf32, #tpu.memory_space<vmem>>) attributes {dimension_semantics = [#tpu.dimension_semantics<arbitrary>], iteration_bounds = array<i64: 1>, scalar_prefetch = 0 : i64, scratch_operands = 3 : i64, tpu.core_type = #tpu.core_type<tc>, window_params = [{pipeline_mode = #tpu.pipeline_mode<synchronous>, transform_indices = @transform_0, window_bounds = array<i64: 16, 1>}, {pipeline_mode = #tpu.pipeline_mode<synchronous>, transform_indices = @transform_1, window_bounds = array<i64: 16, 32>}, {pipeline_mode = #tpu.pipeline_mode<synchronous>, transform_indices = @transform_2, window_bounds = array<i64: 32, 128>}, {pipeline_mode = #tpu.pipeline_mode<synchronous>, transform_indices = @transform_3, window_bounds = array<i64: 32, 128>}, {pipeline_mode = #tpu.pipeline_mode<synchronous>, transform_indices = @transform_4, window_bounds = array<i64: 1, 128>}, {pipeline_mode = #tpu.pipeline_mode<synchronous>, transform_indices = @transform_5, window_bounds = array<i64: 2, 32>}, {pipeline_mode = #tpu.pipeline_mode<synchronous>, transform_indices = @transform_6, window_bounds = array<i64: 2, 32>}]} {
    %c0 = arith.constant 0 : index
    %c0_0 = arith.constant 0 : index
    %0 = vector.load %arg2[%c0, %c0_0] : memref<16x32xf32, #tpu.memory_space<vmem>>, vector<16x32xf32>
    %c0_1 = arith.constant 0 : index
    %c0_2 = arith.constant 0 : index
    %1 = vector.load %arg1[%c0_1, %c0_2] : memref<16x1xi32, #tpu.memory_space<vmem>>, vector<16x1xi32>
    %cst = arith.constant 0.000000e+00 : f32
    %2 = vector.broadcast %cst : f32 to vector<16x32xf32>
    %c0_i32 = arith.constant 0 : i32
    %3 = vector.broadcast %c0_i32 : i32 to vector<16x1xi32>
    %4 = arith.cmpi eq, %1, %3 : vector<16x1xi32>
    %5 = arith.extui %4 : vector<16x1xi1> to vector<16x1xi32>
    %6 = arith.sitofp %5 : vector<16x1xi32> to vector<16x1xf32>
    %7 = vector.extract_strided_slice %0 {offsets = [0, 0], sizes = [1, 32], strides = [1, 1]} : vector<16x32xf32> to vector<1x32xf32>
    %8 = vector.broadcast %6 : vector<16x1xf32> to vector<16x32xf32>
    %9 = vector.broadcast %7 : vector<1x32xf32> to vector<16x32xf32>
    %10 = arith.mulf %8, %9 : vector<16x32xf32>
    %11 = arith.addf %2, %10 : vector<16x32xf32>
    %c1_i32 = arith.constant 1 : i32
    %12 = vector.broadcast %c1_i32 : i32 to vector<16x1xi32>
    %13 = arith.cmpi eq, %1, %12 : vector<16x1xi32>
    %14 = arith.extui %13 : vector<16x1xi1> to vector<16x1xi32>
    %15 = arith.sitofp %14 : vector<16x1xi32> to vector<16x1xf32>
    %16 = vector.extract_strided_slice %0 {offsets = [1, 0], sizes = [1, 32], strides = [1, 1]} : vector<16x32xf32> to vector<1x32xf32>
    %17 = vector.broadcast %15 : vector<16x1xf32> to vector<16x32xf32>
    %18 = vector.broadcast %16 : vector<1x32xf32> to vector<16x32xf32>
    %19 = arith.mulf %17, %18 : vector<16x32xf32>
    %20 = arith.addf %11, %19 : vector<16x32xf32>
    %c2_i32 = arith.constant 2 : i32
    %21 = vector.broadcast %c2_i32 : i32 to vector<16x1xi32>
    %22 = arith.cmpi eq, %1, %21 : vector<16x1xi32>
    %23 = arith.extui %22 : vector<16x1xi1> to vector<16x1xi32>
    %24 = arith.sitofp %23 : vector<16x1xi32> to vector<16x1xf32>
    %25 = vector.extract_strided_slice %0 {offsets = [2, 0], sizes = [1, 32], strides = [1, 1]} : vector<16x32xf32> to vector<1x32xf32>
    %26 = vector.broadcast %24 : vector<16x1xf32> to vector<16x32xf32>
    %27 = vector.broadcast %25 : vector<1x32xf32> to vector<16x32xf32>
    %28 = arith.mulf %26, %27 : vector<16x32xf32>
    %29 = arith.addf %20, %28 : vector<16x32xf32>
    %c3_i32 = arith.constant 3 : i32
    %30 = vector.broadcast %c3_i32 : i32 to vector<16x1xi32>
    %31 = arith.cmpi eq, %1, %30 : vector<16x1xi32>
    %32 = arith.extui %31 : vector<16x1xi1> to vector<16x1xi32>
    %33 = arith.sitofp %32 : vector<16x1xi32> to vector<16x1xf32>
    %34 = vector.extract_strided_slice %0 {offsets = [3, 0], sizes = [1, 32], strides = [1, 1]} : vector<16x32xf32> to vector<1x32xf32>
    %35 = vector.broadcast %33 : vector<16x1xf32> to vector<16x32xf32>
    %36 = vector.broadcast %34 : vector<1x32xf32> to vector<16x32xf32>
    %37 = arith.mulf %35, %36 : vector<16x32xf32>
    %38 = arith.addf %29, %37 : vector<16x32xf32>
    %c4_i32 = arith.constant 4 : i32
    %39 = vector.broadcast %c4_i32 : i32 to vector<16x1xi32>
    %40 = arith.cmpi eq, %1, %39 : vector<16x1xi32>
    %41 = arith.extui %40 : vector<16x1xi1> to vector<16x1xi32>
    %42 = arith.sitofp %41 : vector<16x1xi32> to vector<16x1xf32>
    %43 = vector.extract_strided_slice %0 {offsets = [4, 0], sizes = [1, 32], strides = [1, 1]} : vector<16x32xf32> to vector<1x32xf32>
    %44 = vector.broadcast %42 : vector<16x1xf32> to vector<16x32xf32>
    %45 = vector.broadcast %43 : vector<1x32xf32> to vector<16x32xf32>
    %46 = arith.mulf %44, %45 : vector<16x32xf32>
    %47 = arith.addf %38, %46 : vector<16x32xf32>
    %c5_i32 = arith.constant 5 : i32
    %48 = vector.broadcast %c5_i32 : i32 to vector<16x1xi32>
    %49 = arith.cmpi eq, %1, %48 : vector<16x1xi32>
    %50 = arith.extui %49 : vector<16x1xi1> to vector<16x1xi32>
    %51 = arith.sitofp %50 : vector<16x1xi32> to vector<16x1xf32>
    %52 = vector.extract_strided_slice %0 {offsets = [5, 0], sizes = [1, 32], strides = [1, 1]} : vector<16x32xf32> to vector<1x32xf32>
    %53 = vector.broadcast %51 : vector<16x1xf32> to vector<16x32xf32>
    %54 = vector.broadcast %52 : vector<1x32xf32> to vector<16x32xf32>
    %55 = arith.mulf %53, %54 : vector<16x32xf32>
    %56 = arith.addf %47, %55 : vector<16x32xf32>
    %c6_i32 = arith.constant 6 : i32
    %57 = vector.broadcast %c6_i32 : i32 to vector<16x1xi32>
    %58 = arith.cmpi eq, %1, %57 : vector<16x1xi32>
    %59 = arith.extui %58 : vector<16x1xi1> to vector<16x1xi32>
    %60 = arith.sitofp %59 : vector<16x1xi32> to vector<16x1xf32>
    %61 = vector.extract_strided_slice %0 {offsets = [6, 0], sizes = [1, 32], strides = [1, 1]} : vector<16x32xf32> to vector<1x32xf32>
    %62 = vector.broadcast %60 : vector<16x1xf32> to vector<16x32xf32>
    %63 = vector.broadcast %61 : vector<1x32xf32> to vector<16x32xf32>
    %64 = arith.mulf %62, %63 : vector<16x32xf32>
    %65 = arith.addf %56, %64 : vector<16x32xf32>
    %c7_i32 = arith.constant 7 : i32
    %66 = vector.broadcast %c7_i32 : i32 to vector<16x1xi32>
    %67 = arith.cmpi eq, %1, %66 : vector<16x1xi32>
    %68 = arith.extui %67 : vector<16x1xi1> to vector<16x1xi32>
    %69 = arith.sitofp %68 : vector<16x1xi32> to vector<16x1xf32>
    %70 = vector.extract_strided_slice %0 {offsets = [7, 0], sizes = [1, 32], strides = [1, 1]} : vector<16x32xf32> to vector<1x32xf32>
    %71 = vector.broadcast %69 : vector<16x1xf32> to vector<16x32xf32>
    %72 = vector.broadcast %70 : vector<1x32xf32> to vector<16x32xf32>
    %73 = arith.mulf %71, %72 : vector<16x32xf32>
    %74 = arith.addf %65, %73 : vector<16x32xf32>
    %c8_i32 = arith.constant 8 : i32
    %75 = vector.broadcast %c8_i32 : i32 to vector<16x1xi32>
    %76 = arith.cmpi eq, %1, %75 : vector<16x1xi32>
    %77 = arith.extui %76 : vector<16x1xi1> to vector<16x1xi32>
    %78 = arith.sitofp %77 : vector<16x1xi32> to vector<16x1xf32>
    %79 = vector.extract_strided_slice %0 {offsets = [8, 0], sizes = [1, 32], strides = [1, 1]} : vector<16x32xf32> to vector<1x32xf32>
    %80 = vector.broadcast %78 : vector<16x1xf32> to vector<16x32xf32>
    %81 = vector.broadcast %79 : vector<1x32xf32> to vector<16x32xf32>
    %82 = arith.mulf %80, %81 : vector<16x32xf32>
    %83 = arith.addf %74, %82 : vector<16x32xf32>
    %c9_i32 = arith.constant 9 : i32
    %84 = vector.broadcast %c9_i32 : i32 to vector<16x1xi32>
    %85 = arith.cmpi eq, %1, %84 : vector<16x1xi32>
    %86 = arith.extui %85 : vector<16x1xi1> to vector<16x1xi32>
    %87 = arith.sitofp %86 : vector<16x1xi32> to vector<16x1xf32>
    %88 = vector.extract_strided_slice %0 {offsets = [9, 0], sizes = [1, 32], strides = [1, 1]} : vector<16x32xf32> to vector<1x32xf32>
    %89 = vector.broadcast %87 : vector<16x1xf32> to vector<16x32xf32>
    %90 = vector.broadcast %88 : vector<1x32xf32> to vector<16x32xf32>
    %91 = arith.mulf %89, %90 : vector<16x32xf32>
    %92 = arith.addf %83, %91 : vector<16x32xf32>
    %c10_i32 = arith.constant 10 : i32
    %93 = vector.broadcast %c10_i32 : i32 to vector<16x1xi32>
    %94 = arith.cmpi eq, %1, %93 : vector<16x1xi32>
    %95 = arith.extui %94 : vector<16x1xi1> to vector<16x1xi32>
    %96 = arith.sitofp %95 : vector<16x1xi32> to vector<16x1xf32>
    %97 = vector.extract_strided_slice %0 {offsets = [10, 0], sizes = [1, 32], strides = [1, 1]} : vector<16x32xf32> to vector<1x32xf32>
    %98 = vector.broadcast %96 : vector<16x1xf32> to vector<16x32xf32>
    %99 = vector.broadcast %97 : vector<1x32xf32> to vector<16x32xf32>
    %100 = arith.mulf %98, %99 : vector<16x32xf32>
    %101 = arith.addf %92, %100 : vector<16x32xf32>
    %c11_i32 = arith.constant 11 : i32
    %102 = vector.broadcast %c11_i32 : i32 to vector<16x1xi32>
    %103 = arith.cmpi eq, %1, %102 : vector<16x1xi32>
    %104 = arith.extui %103 : vector<16x1xi1> to vector<16x1xi32>
    %105 = arith.sitofp %104 : vector<16x1xi32> to vector<16x1xf32>
    %106 = vector.extract_strided_slice %0 {offsets = [11, 0], sizes = [1, 32], strides = [1, 1]} : vector<16x32xf32> to vector<1x32xf32>
    %107 = vector.broadcast %105 : vector<16x1xf32> to vector<16x32xf32>
    %108 = vector.broadcast %106 : vector<1x32xf32> to vector<16x32xf32>
    %109 = arith.mulf %107, %108 : vector<16x32xf32>
    %110 = arith.addf %101, %109 : vector<16x32xf32>
    %c12_i32 = arith.constant 12 : i32
    %111 = vector.broadcast %c12_i32 : i32 to vector<16x1xi32>
    %112 = arith.cmpi eq, %1, %111 : vector<16x1xi32>
    %113 = arith.extui %112 : vector<16x1xi1> to vector<16x1xi32>
    %114 = arith.sitofp %113 : vector<16x1xi32> to vector<16x1xf32>
    %115 = vector.extract_strided_slice %0 {offsets = [12, 0], sizes = [1, 32], strides = [1, 1]} : vector<16x32xf32> to vector<1x32xf32>
    %116 = vector.broadcast %114 : vector<16x1xf32> to vector<16x32xf32>
    %117 = vector.broadcast %115 : vector<1x32xf32> to vector<16x32xf32>
    %118 = arith.mulf %116, %117 : vector<16x32xf32>
    %119 = arith.addf %110, %118 : vector<16x32xf32>
    %c13_i32 = arith.constant 13 : i32
    %120 = vector.broadcast %c13_i32 : i32 to vector<16x1xi32>
    %121 = arith.cmpi eq, %1, %120 : vector<16x1xi32>
    %122 = arith.extui %121 : vector<16x1xi1> to vector<16x1xi32>
    %123 = arith.sitofp %122 : vector<16x1xi32> to vector<16x1xf32>
    %124 = vector.extract_strided_slice %0 {offsets = [13, 0], sizes = [1, 32], strides = [1, 1]} : vector<16x32xf32> to vector<1x32xf32>
    %125 = vector.broadcast %123 : vector<16x1xf32> to vector<16x32xf32>
    %126 = vector.broadcast %124 : vector<1x32xf32> to vector<16x32xf32>
    %127 = arith.mulf %125, %126 : vector<16x32xf32>
    %128 = arith.addf %119, %127 : vector<16x32xf32>
    %c14_i32 = arith.constant 14 : i32
    %129 = vector.broadcast %c14_i32 : i32 to vector<16x1xi32>
    %130 = arith.cmpi eq, %1, %129 : vector<16x1xi32>
    %131 = arith.extui %130 : vector<16x1xi1> to vector<16x1xi32>
    %132 = arith.sitofp %131 : vector<16x1xi32> to vector<16x1xf32>
    %133 = vector.extract_strided_slice %0 {offsets = [14, 0], sizes = [1, 32], strides = [1, 1]} : vector<16x32xf32> to vector<1x32xf32>
    %134 = vector.broadcast %132 : vector<16x1xf32> to vector<16x32xf32>
    %135 = vector.broadcast %133 : vector<1x32xf32> to vector<16x32xf32>
    %136 = arith.mulf %134, %135 : vector<16x32xf32>
    %137 = arith.addf %128, %136 : vector<16x32xf32>
    %c15_i32 = arith.constant 15 : i32
    %138 = vector.broadcast %c15_i32 : i32 to vector<16x1xi32>
    %139 = arith.cmpi eq, %1, %138 : vector<16x1xi32>
    %140 = arith.extui %139 : vector<16x1xi1> to vector<16x1xi32>
    %141 = arith.sitofp %140 : vector<16x1xi32> to vector<16x1xf32>
    %142 = vector.extract_strided_slice %0 {offsets = [15, 0], sizes = [1, 32], strides = [1, 1]} : vector<16x32xf32> to vector<1x32xf32>
    %143 = vector.broadcast %141 : vector<16x1xf32> to vector<16x32xf32>
    %144 = vector.broadcast %142 : vector<1x32xf32> to vector<16x32xf32>
    %145 = arith.mulf %143, %144 : vector<16x32xf32>
    %146 = arith.addf %137, %145 : vector<16x32xf32>
    %c0_3 = arith.constant 0 : index
    %c0_4 = arith.constant 0 : index
    %147 = vector.load %arg3[%c0_3, %c0_4] : memref<32x128xf32, #tpu.memory_space<vmem>>, vector<32x128xf32>
    %cst_5 = arith.constant dense<0.000000e+00> : vector<16x128xf32>
    %148 = tpu.matmul %146, %147, %cst_5 {dimension_numbers = #tpu.dot_dimension_numbers<[1], [0], [0], [1], [0, 0, 1, 1], [], []>} : vector<16x32xf32>, vector<32x128xf32>, vector<16x128xf32> -> vector<16x128xf32>
    %c0_6 = arith.constant 0 : index
    %c0_7 = arith.constant 0 : index
    %149 = vector.load %arg5[%c0_6, %c0_7] : memref<1x128xf32, #tpu.memory_space<vmem>>, vector<1x128xf32>
    %150 = vector.broadcast %149 : vector<1x128xf32> to vector<16x128xf32>
    %151 = arith.addf %148, %150 : vector<16x128xf32>
    %152 = vector.extract_strided_slice %151 {offsets = [0, 0], sizes = [2, 128], strides = [1, 1]} : vector<16x128xf32> to vector<2x128xf32>
    %c0_8 = arith.constant 0 : index
    %c0_9 = arith.constant 0 : index
    %c0_10 = arith.constant 0 : index
    %153 = vector.load %arg8[%c0_8, %c0_9, %c0_10] : memref<8x2x128xf32, #tpu.memory_space<vmem>>, vector<1x2x128xf32>
    %154 = vector.shape_cast %153 : vector<1x2x128xf32> to vector<2x128xf32>
    %155 = vector.shape_cast %152 : vector<2x128xf32> to vector<1x2x128xf32>
    tpu.vector_store %arg8[%c0_8, %c0_9, %c0_10], %155 {strides = array<i32>} : memref<8x2x128xf32, #tpu.memory_space<vmem>>, vector<1x2x128xf32>,
    %156 = vector.extract_strided_slice %151 {offsets = [2, 0], sizes = [2, 128], strides = [1, 1]} : vector<16x128xf32> to vector<2x128xf32>
    %c1 = arith.constant 1 : index
    %c0_11 = arith.constant 0 : index
    %c0_12 = arith.constant 0 : index
    %157 = vector.load %arg8[%c1, %c0_11, %c0_12] : memref<8x2x128xf32, #tpu.memory_space<vmem>>, vector<1x2x128xf32>
    %158 = vector.shape_cast %157 : vector<1x2x128xf32> to vector<2x128xf32>
    %159 = vector.shape_cast %156 : vector<2x128xf32> to vector<1x2x128xf32>
    tpu.vector_store %arg8[%c1, %c0_11, %c0_12], %159 {strides = array<i32>} : memref<8x2x128xf32, #tpu.memory_space<vmem>>, vector<1x2x128xf32>,
    %160 = vector.extract_strided_slice %151 {offsets = [4, 0], sizes = [2, 128], strides = [1, 1]} : vector<16x128xf32> to vector<2x128xf32>
    %c2 = arith.constant 2 : index
    %c0_13 = arith.constant 0 : index
    %c0_14 = arith.constant 0 : index
    %161 = vector.load %arg8[%c2, %c0_13, %c0_14] : memref<8x2x128xf32, #tpu.memory_space<vmem>>, vector<1x2x128xf32>
    %162 = vector.shape_cast %161 : vector<1x2x128xf32> to vector<2x128xf32>
    %163 = vector.shape_cast %160 : vector<2x128xf32> to vector<1x2x128xf32>
    tpu.vector_store %arg8[%c2, %c0_13, %c0_14], %163 {strides = array<i32>} : memref<8x2x128xf32, #tpu.memory_space<vmem>>, vector<1x2x128xf32>,
    %164 = vector.extract_strided_slice %151 {offsets = [6, 0], sizes = [2, 128], strides = [1, 1]} : vector<16x128xf32> to vector<2x128xf32>
    %c3 = arith.constant 3 : index
    %c0_15 = arith.constant 0 : index
    %c0_16 = arith.constant 0 : index
    %165 = vector.load %arg8[%c3, %c0_15, %c0_16] : memref<8x2x128xf32, #tpu.memory_space<vmem>>, vector<1x2x128xf32>
    %166 = vector.shape_cast %165 : vector<1x2x128xf32> to vector<2x128xf32>
    %167 = vector.shape_cast %164 : vector<2x128xf32> to vector<1x2x128xf32>
    tpu.vector_store %arg8[%c3, %c0_15, %c0_16], %167 {strides = array<i32>} : memref<8x2x128xf32, #tpu.memory_space<vmem>>, vector<1x2x128xf32>,
    %168 = vector.extract_strided_slice %151 {offsets = [8, 0], sizes = [2, 128], strides = [1, 1]} : vector<16x128xf32> to vector<2x128xf32>
    %c4 = arith.constant 4 : index
    %c0_17 = arith.constant 0 : index
    %c0_18 = arith.constant 0 : index
    %169 = vector.load %arg8[%c4, %c0_17, %c0_18] : memref<8x2x128xf32, #tpu.memory_space<vmem>>, vector<1x2x128xf32>
    %170 = vector.shape_cast %169 : vector<1x2x128xf32> to vector<2x128xf32>
    %171 = vector.shape_cast %168 : vector<2x128xf32> to vector<1x2x128xf32>
    tpu.vector_store %arg8[%c4, %c0_17, %c0_18], %171 {strides = array<i32>} : memref<8x2x128xf32, #tpu.memory_space<vmem>>, vector<1x2x128xf32>,
    %172 = vector.extract_strided_slice %151 {offsets = [10, 0], sizes = [2, 128], strides = [1, 1]} : vector<16x128xf32> to vector<2x128xf32>
    %c5 = arith.constant 5 : index
    %c0_19 = arith.constant 0 : index
    %c0_20 = arith.constant 0 : index
    %173 = vector.load %arg8[%c5, %c0_19, %c0_20] : memref<8x2x128xf32, #tpu.memory_space<vmem>>, vector<1x2x128xf32>
    %174 = vector.shape_cast %173 : vector<1x2x128xf32> to vector<2x128xf32>
    %175 = vector.shape_cast %172 : vector<2x128xf32> to vector<1x2x128xf32>
    tpu.vector_store %arg8[%c5, %c0_19, %c0_20], %175 {strides = array<i32>} : memref<8x2x128xf32, #tpu.memory_space<vmem>>, vector<1x2x128xf32>,
    %176 = vector.extract_strided_slice %151 {offsets = [12, 0], sizes = [2, 128], strides = [1, 1]} : vector<16x128xf32> to vector<2x128xf32>
    %c6 = arith.constant 6 : index
    %c0_21 = arith.constant 0 : index
    %c0_22 = arith.constant 0 : index
    %177 = vector.load %arg8[%c6, %c0_21, %c0_22] : memref<8x2x128xf32, #tpu.memory_space<vmem>>, vector<1x2x128xf32>
    %178 = vector.shape_cast %177 : vector<1x2x128xf32> to vector<2x128xf32>
    %179 = vector.shape_cast %176 : vector<2x128xf32> to vector<1x2x128xf32>
    tpu.vector_store %arg8[%c6, %c0_21, %c0_22], %179 {strides = array<i32>} : memref<8x2x128xf32, #tpu.memory_space<vmem>>, vector<1x2x128xf32>,
    %180 = vector.extract_strided_slice %151 {offsets = [14, 0], sizes = [2, 128], strides = [1, 1]} : vector<16x128xf32> to vector<2x128xf32>
    %c7 = arith.constant 7 : index
    %c0_23 = arith.constant 0 : index
    %c0_24 = arith.constant 0 : index
    %181 = vector.load %arg8[%c7, %c0_23, %c0_24] : memref<8x2x128xf32, #tpu.memory_space<vmem>>, vector<1x2x128xf32>
    %182 = vector.shape_cast %181 : vector<1x2x128xf32> to vector<2x128xf32>
    %183 = vector.shape_cast %180 : vector<2x128xf32> to vector<1x2x128xf32>
    tpu.vector_store %arg8[%c7, %c0_23, %c0_24], %183 {strides = array<i32>} : memref<8x2x128xf32, #tpu.memory_space<vmem>>, vector<1x2x128xf32>,
    %c0_25 = arith.constant 0 : index
    %c0_26 = arith.constant 0 : index
    %184 = vector.load %arg4[%c0_25, %c0_26] : memref<32x128xf32, #tpu.memory_space<vmem>>, vector<32x128xf32>
    %185 = tpu.iota {dimensions = array<i32: 1>} : vector<2x128xi32>
    %c64_i32 = arith.constant 64 : i32
    %186 = vector.broadcast %c64_i32 : i32 to vector<2x128xi32>
    %187 = arith.cmpi sge, %185, %186 : vector<2x128xi32>
    %c96_i32 = arith.constant 96 : i32
    %188 = vector.broadcast %c96_i32 : i32 to vector<2x128xi32>
    %189 = arith.cmpi slt, %185, %188 : vector<2x128xi32>
    %190 = arith.andi %187, %189 : vector<2x128xi1>
    %cst_27 = arith.constant 0.000000e+00 : f32
    %191 = vector.broadcast %cst_27 : f32 to vector<2x32xf32>
    %c0_28 = arith.constant 0 : index
    %c0_29 = arith.constant 0 : index
    %192 = vector.load %arg9[%c0_28, %c0_29] : memref<2x32xf32, #tpu.memory_space<vmem>>, vector<2x32xf32>
    tpu.vector_store %arg9[%c0_28, %c0_29], %191 {strides = array<i32>} : memref<2x32xf32, #tpu.memory_space<vmem>>, vector<2x32xf32>,
    %cst_30 = arith.constant 0.000000e+00 : f32
    %193 = vector.broadcast %cst_30 : f32 to vector<2x32xf32>
    %c0_31 = arith.constant 0 : index
    %c0_32 = arith.constant 0 : index
    %194 = vector.load %arg10[%c0_31, %c0_32] : memref<2x32xf32, #tpu.memory_space<vmem>>, vector<2x32xf32>
    tpu.vector_store %arg10[%c0_31, %c0_32], %193 {strides = array<i32>} : memref<2x32xf32, #tpu.memory_space<vmem>>, vector<2x32xf32>,
    %c0_i32_33 = arith.constant 0 : i32
    %c0_34 = arith.constant 0 : index
    %c0_35 = arith.constant 0 : index
    %195 = vector.load %arg9[%c0_34, %c0_35] : memref<2x32xf32, #tpu.memory_space<vmem>>, vector<2x32xf32>
    %c0_36 = arith.constant 0 : index
    %c0_37 = arith.constant 0 : index
    %196 = vector.load %arg10[%c0_36, %c0_37] : memref<2x32xf32, #tpu.memory_space<vmem>>, vector<2x32xf32>
    %197 = arith.index_cast %c0_i32_33 : i32 to index
    %c0_38 = arith.constant 0 : index
    %c0_39 = arith.constant 0 : index
    %198 = vector.load %arg8[%197, %c0_38, %c0_39] : memref<8x2x128xf32, #tpu.memory_space<vmem>>, vector<1x2x128xf32>
    %199 = vector.shape_cast %198 : vector<1x2x128xf32> to vector<2x128xf32>
    %cst_40 = arith.constant dense<0.000000e+00> : vector<2x128xf32>
    %200 = tpu.matmul %195, %184, %cst_40 {dimension_numbers = #tpu.dot_dimension_numbers<[1], [0], [0], [1], [0, 0, 1, 1], [], []>} : vector<2x32xf32>, vector<32x128xf32>, vector<2x128xf32> -> vector<2x128xf32>
    %201 = arith.addf %199, %200 : vector<2x128xf32>
    %202 = math.tanh %201 : vector<2x128xf32>
    %203 = arith.negf %201 : vector<2x128xf32>
    %204 = math.exp %203 : vector<2x128xf32>
    %cst_41 = arith.constant 1.000000e+00 : f32
    %205 = vector.broadcast %cst_41 : f32 to vector<2x128xf32>
    %206 = arith.addf %205, %204 : vector<2x128xf32>
    %207 = arith.divf %205, %206 : vector<2x128xf32>
    %208 = arith.select %190, %202, %207 : vector<2x128xi1>, vector<2x128xf32>
    %209 = vector.extract_strided_slice %208 {offsets = [0, 0], sizes = [2, 32], strides = [1, 1]} : vector<2x128xf32> to vector<2x32xf32>
    %210 = vector.extract_strided_slice %208 {offsets = [0, 32], sizes = [2, 32], strides = [1, 1]} : vector<2x128xf32> to vector<2x32xf32>
    %211 = vector.extract_strided_slice %208 {offsets = [0, 64], sizes = [2, 32], strides = [1, 1]} : vector<2x128xf32> to vector<2x32xf32>
    %212 = vector.extract_strided_slice %208 {offsets = [0, 96], sizes = [2, 32], strides = [1, 1]} : vector<2x128xf32> to vector<2x32xf32>
    %213 = arith.mulf %210, %196 : vector<2x32xf32>
    %214 = arith.mulf %209, %211 : vector<2x32xf32>
    %215 = arith.addf %213, %214 : vector<2x32xf32>
    %216 = math.tanh %215 : vector<2x32xf32>
    %217 = arith.mulf %212, %216 : vector<2x32xf32>
    %c0_42 = arith.constant 0 : index
    %c0_43 = arith.constant 0 : index
    %218 = vector.load %arg9[%c0_42, %c0_43] : memref<2x32xf32, #tpu.memory_space<vmem>>, vector<2x32xf32>
    tpu.vector_store %arg9[%c0_42, %c0_43], %217 {strides = array<i32>} : memref<2x32xf32, #tpu.memory_space<vmem>>, vector<2x32xf32>,
    %c0_44 = arith.constant 0 : index
    %c0_45 = arith.constant 0 : index
    %219 = vector.load %arg10[%c0_44, %c0_45] : memref<2x32xf32, #tpu.memory_space<vmem>>, vector<2x32xf32>
    tpu.vector_store %arg10[%c0_44, %c0_45], %215 {strides = array<i32>} : memref<2x32xf32, #tpu.memory_space<vmem>>, vector<2x32xf32>,
    %c1_i32_46 = arith.constant 1 : i32
    %c0_47 = arith.constant 0 : index
    %c0_48 = arith.constant 0 : index
    %220 = vector.load %arg9[%c0_47, %c0_48] : memref<2x32xf32, #tpu.memory_space<vmem>>, vector<2x32xf32>
    %c0_49 = arith.constant 0 : index
    %c0_50 = arith.constant 0 : index
    %221 = vector.load %arg10[%c0_49, %c0_50] : memref<2x32xf32, #tpu.memory_space<vmem>>, vector<2x32xf32>
    %222 = arith.index_cast %c1_i32_46 : i32 to index
    %c0_51 = arith.constant 0 : index
    %c0_52 = arith.constant 0 : index
    %223 = vector.load %arg8[%222, %c0_51, %c0_52] : memref<8x2x128xf32, #tpu.memory_space<vmem>>, vector<1x2x128xf32>
    %224 = vector.shape_cast %223 : vector<1x2x128xf32> to vector<2x128xf32>
    %cst_53 = arith.constant dense<0.000000e+00> : vector<2x128xf32>
    %225 = tpu.matmul %220, %184, %cst_53 {dimension_numbers = #tpu.dot_dimension_numbers<[1], [0], [0], [1], [0, 0, 1, 1], [], []>} : vector<2x32xf32>, vector<32x128xf32>, vector<2x128xf32> -> vector<2x128xf32>
    %226 = arith.addf %224, %225 : vector<2x128xf32>
    %227 = math.tanh %226 : vector<2x128xf32>
    %228 = arith.negf %226 : vector<2x128xf32>
    %229 = math.exp %228 : vector<2x128xf32>
    %cst_54 = arith.constant 1.000000e+00 : f32
    %230 = vector.broadcast %cst_54 : f32 to vector<2x128xf32>
    %231 = arith.addf %230, %229 : vector<2x128xf32>
    %232 = arith.divf %230, %231 : vector<2x128xf32>
    %233 = arith.select %190, %227, %232 : vector<2x128xi1>, vector<2x128xf32>
    %234 = vector.extract_strided_slice %233 {offsets = [0, 0], sizes = [2, 32], strides = [1, 1]} : vector<2x128xf32> to vector<2x32xf32>
    %235 = vector.extract_strided_slice %233 {offsets = [0, 32], sizes = [2, 32], strides = [1, 1]} : vector<2x128xf32> to vector<2x32xf32>
    %236 = vector.extract_strided_slice %233 {offsets = [0, 64], sizes = [2, 32], strides = [1, 1]} : vector<2x128xf32> to vector<2x32xf32>
    %237 = vector.extract_strided_slice %233 {offsets = [0, 96], sizes = [2, 32], strides = [1, 1]} : vector<2x128xf32> to vector<2x32xf32>
    %238 = arith.mulf %235, %221 : vector<2x32xf32>
    %239 = arith.mulf %234, %236 : vector<2x32xf32>
    %240 = arith.addf %238, %239 : vector<2x32xf32>
    %241 = math.tanh %240 : vector<2x32xf32>
    %242 = arith.mulf %237, %241 : vector<2x32xf32>
    %c0_55 = arith.constant 0 : index
    %c0_56 = arith.constant 0 : index
    %243 = vector.load %arg9[%c0_55, %c0_56] : memref<2x32xf32, #tpu.memory_space<vmem>>, vector<2x32xf32>
    tpu.vector_store %arg9[%c0_55, %c0_56], %242 {strides = array<i32>} : memref<2x32xf32, #tpu.memory_space<vmem>>, vector<2x32xf32>,
    %c0_57 = arith.constant 0 : index
    %c0_58 = arith.constant 0 : index
    %244 = vector.load %arg10[%c0_57, %c0_58] : memref<2x32xf32, #tpu.memory_space<vmem>>, vector<2x32xf32>
    tpu.vector_store %arg10[%c0_57, %c0_58], %240 {strides = array<i32>} : memref<2x32xf32, #tpu.memory_space<vmem>>, vector<2x32xf32>,
    %c2_i32_59 = arith.constant 2 : i32
    %c0_60 = arith.constant 0 : index
    %c0_61 = arith.constant 0 : index
    %245 = vector.load %arg9[%c0_60, %c0_61] : memref<2x32xf32, #tpu.memory_space<vmem>>, vector<2x32xf32>
    %c0_62 = arith.constant 0 : index
    %c0_63 = arith.constant 0 : index
    %246 = vector.load %arg10[%c0_62, %c0_63] : memref<2x32xf32, #tpu.memory_space<vmem>>, vector<2x32xf32>
    %247 = arith.index_cast %c2_i32_59 : i32 to index
    %c0_64 = arith.constant 0 : index
    %c0_65 = arith.constant 0 : index
    %248 = vector.load %arg8[%247, %c0_64, %c0_65] : memref<8x2x128xf32, #tpu.memory_space<vmem>>, vector<1x2x128xf32>
    %249 = vector.shape_cast %248 : vector<1x2x128xf32> to vector<2x128xf32>
    %cst_66 = arith.constant dense<0.000000e+00> : vector<2x128xf32>
    %250 = tpu.matmul %245, %184, %cst_66 {dimension_numbers = #tpu.dot_dimension_numbers<[1], [0], [0], [1], [0, 0, 1, 1], [], []>} : vector<2x32xf32>, vector<32x128xf32>, vector<2x128xf32> -> vector<2x128xf32>
    %251 = arith.addf %249, %250 : vector<2x128xf32>
    %252 = math.tanh %251 : vector<2x128xf32>
    %253 = arith.negf %251 : vector<2x128xf32>
    %254 = math.exp %253 : vector<2x128xf32>
    %cst_67 = arith.constant 1.000000e+00 : f32
    %255 = vector.broadcast %cst_67 : f32 to vector<2x128xf32>
    %256 = arith.addf %255, %254 : vector<2x128xf32>
    %257 = arith.divf %255, %256 : vector<2x128xf32>
    %258 = arith.select %190, %252, %257 : vector<2x128xi1>, vector<2x128xf32>
    %259 = vector.extract_strided_slice %258 {offsets = [0, 0], sizes = [2, 32], strides = [1, 1]} : vector<2x128xf32> to vector<2x32xf32>
    %260 = vector.extract_strided_slice %258 {offsets = [0, 32], sizes = [2, 32], strides = [1, 1]} : vector<2x128xf32> to vector<2x32xf32>
    %261 = vector.extract_strided_slice %258 {offsets = [0, 64], sizes = [2, 32], strides = [1, 1]} : vector<2x128xf32> to vector<2x32xf32>
    %262 = vector.extract_strided_slice %258 {offsets = [0, 96], sizes = [2, 32], strides = [1, 1]} : vector<2x128xf32> to vector<2x32xf32>
    %263 = arith.mulf %260, %246 : vector<2x32xf32>
    %264 = arith.mulf %259, %261 : vector<2x32xf32>
    %265 = arith.addf %263, %264 : vector<2x32xf32>
    %266 = math.tanh %265 : vector<2x32xf32>
    %267 = arith.mulf %262, %266 : vector<2x32xf32>
    %c0_68 = arith.constant 0 : index
    %c0_69 = arith.constant 0 : index
    %268 = vector.load %arg9[%c0_68, %c0_69] : memref<2x32xf32, #tpu.memory_space<vmem>>, vector<2x32xf32>
    tpu.vector_store %arg9[%c0_68, %c0_69], %267 {strides = array<i32>} : memref<2x32xf32, #tpu.memory_space<vmem>>, vector<2x32xf32>,
    %c0_70 = arith.constant 0 : index
    %c0_71 = arith.constant 0 : index
    %269 = vector.load %arg10[%c0_70, %c0_71] : memref<2x32xf32, #tpu.memory_space<vmem>>, vector<2x32xf32>
    tpu.vector_store %arg10[%c0_70, %c0_71], %265 {strides = array<i32>} : memref<2x32xf32, #tpu.memory_space<vmem>>, vector<2x32xf32>,
    %c3_i32_72 = arith.constant 3 : i32
    %c0_73 = arith.constant 0 : index
    %c0_74 = arith.constant 0 : index
    %270 = vector.load %arg9[%c0_73, %c0_74] : memref<2x32xf32, #tpu.memory_space<vmem>>, vector<2x32xf32>
    %c0_75 = arith.constant 0 : index
    %c0_76 = arith.constant 0 : index
    %271 = vector.load %arg10[%c0_75, %c0_76] : memref<2x32xf32, #tpu.memory_space<vmem>>, vector<2x32xf32>
    %272 = arith.index_cast %c3_i32_72 : i32 to index
    %c0_77 = arith.constant 0 : index
    %c0_78 = arith.constant 0 : index
    %273 = vector.load %arg8[%272, %c0_77, %c0_78] : memref<8x2x128xf32, #tpu.memory_space<vmem>>, vector<1x2x128xf32>
    %274 = vector.shape_cast %273 : vector<1x2x128xf32> to vector<2x128xf32>
    %cst_79 = arith.constant dense<0.000000e+00> : vector<2x128xf32>
    %275 = tpu.matmul %270, %184, %cst_79 {dimension_numbers = #tpu.dot_dimension_numbers<[1], [0], [0], [1], [0, 0, 1, 1], [], []>} : vector<2x32xf32>, vector<32x128xf32>, vector<2x128xf32> -> vector<2x128xf32>
    %276 = arith.addf %274, %275 : vector<2x128xf32>
    %277 = math.tanh %276 : vector<2x128xf32>
    %278 = arith.negf %276 : vector<2x128xf32>
    %279 = math.exp %278 : vector<2x128xf32>
    %cst_80 = arith.constant 1.000000e+00 : f32
    %280 = vector.broadcast %cst_80 : f32 to vector<2x128xf32>
    %281 = arith.addf %280, %279 : vector<2x128xf32>
    %282 = arith.divf %280, %281 : vector<2x128xf32>
    %283 = arith.select %190, %277, %282 : vector<2x128xi1>, vector<2x128xf32>
    %284 = vector.extract_strided_slice %283 {offsets = [0, 0], sizes = [2, 32], strides = [1, 1]} : vector<2x128xf32> to vector<2x32xf32>
    %285 = vector.extract_strided_slice %283 {offsets = [0, 32], sizes = [2, 32], strides = [1, 1]} : vector<2x128xf32> to vector<2x32xf32>
    %286 = vector.extract_strided_slice %283 {offsets = [0, 64], sizes = [2, 32], strides = [1, 1]} : vector<2x128xf32> to vector<2x32xf32>
    %287 = vector.extract_strided_slice %283 {offsets = [0, 96], sizes = [2, 32], strides = [1, 1]} : vector<2x128xf32> to vector<2x32xf32>
    %288 = arith.mulf %285, %271 : vector<2x32xf32>
    %289 = arith.mulf %284, %286 : vector<2x32xf32>
    %290 = arith.addf %288, %289 : vector<2x32xf32>
    %291 = math.tanh %290 : vector<2x32xf32>
    %292 = arith.mulf %287, %291 : vector<2x32xf32>
    %c0_81 = arith.constant 0 : index
    %c0_82 = arith.constant 0 : index
    %293 = vector.load %arg9[%c0_81, %c0_82] : memref<2x32xf32, #tpu.memory_space<vmem>>, vector<2x32xf32>
    tpu.vector_store %arg9[%c0_81, %c0_82], %292 {strides = array<i32>} : memref<2x32xf32, #tpu.memory_space<vmem>>, vector<2x32xf32>,
    %c0_83 = arith.constant 0 : index
    %c0_84 = arith.constant 0 : index
    %294 = vector.load %arg10[%c0_83, %c0_84] : memref<2x32xf32, #tpu.memory_space<vmem>>, vector<2x32xf32>
    tpu.vector_store %arg10[%c0_83, %c0_84], %290 {strides = array<i32>} : memref<2x32xf32, #tpu.memory_space<vmem>>, vector<2x32xf32>,
    %c4_i32_85 = arith.constant 4 : i32
    %c0_86 = arith.constant 0 : index
    %c0_87 = arith.constant 0 : index
    %295 = vector.load %arg9[%c0_86, %c0_87] : memref<2x32xf32, #tpu.memory_space<vmem>>, vector<2x32xf32>
    %c0_88 = arith.constant 0 : index
    %c0_89 = arith.constant 0 : index
    %296 = vector.load %arg10[%c0_88, %c0_89] : memref<2x32xf32, #tpu.memory_space<vmem>>, vector<2x32xf32>
    %297 = arith.index_cast %c4_i32_85 : i32 to index
    %c0_90 = arith.constant 0 : index
    %c0_91 = arith.constant 0 : index
    %298 = vector.load %arg8[%297, %c0_90, %c0_91] : memref<8x2x128xf32, #tpu.memory_space<vmem>>, vector<1x2x128xf32>
    %299 = vector.shape_cast %298 : vector<1x2x128xf32> to vector<2x128xf32>
    %cst_92 = arith.constant dense<0.000000e+00> : vector<2x128xf32>
    %300 = tpu.matmul %295, %184, %cst_92 {dimension_numbers = #tpu.dot_dimension_numbers<[1], [0], [0], [1], [0, 0, 1, 1], [], []>} : vector<2x32xf32>, vector<32x128xf32>, vector<2x128xf32> -> vector<2x128xf32>
    %301 = arith.addf %299, %300 : vector<2x128xf32>
    %302 = math.tanh %301 : vector<2x128xf32>
    %303 = arith.negf %301 : vector<2x128xf32>
    %304 = math.exp %303 : vector<2x128xf32>
    %cst_93 = arith.constant 1.000000e+00 : f32
    %305 = vector.broadcast %cst_93 : f32 to vector<2x128xf32>
    %306 = arith.addf %305, %304 : vector<2x128xf32>
    %307 = arith.divf %305, %306 : vector<2x128xf32>
    %308 = arith.select %190, %302, %307 : vector<2x128xi1>, vector<2x128xf32>
    %309 = vector.extract_strided_slice %308 {offsets = [0, 0], sizes = [2, 32], strides = [1, 1]} : vector<2x128xf32> to vector<2x32xf32>
    %310 = vector.extract_strided_slice %308 {offsets = [0, 32], sizes = [2, 32], strides = [1, 1]} : vector<2x128xf32> to vector<2x32xf32>
    %311 = vector.extract_strided_slice %308 {offsets = [0, 64], sizes = [2, 32], strides = [1, 1]} : vector<2x128xf32> to vector<2x32xf32>
    %312 = vector.extract_strided_slice %308 {offsets = [0, 96], sizes = [2, 32], strides = [1, 1]} : vector<2x128xf32> to vector<2x32xf32>
    %313 = arith.mulf %310, %296 : vector<2x32xf32>
    %314 = arith.mulf %309, %311 : vector<2x32xf32>
    %315 = arith.addf %313, %314 : vector<2x32xf32>
    %316 = math.tanh %315 : vector<2x32xf32>
    %317 = arith.mulf %312, %316 : vector<2x32xf32>
    %c0_94 = arith.constant 0 : index
    %c0_95 = arith.constant 0 : index
    %318 = vector.load %arg9[%c0_94, %c0_95] : memref<2x32xf32, #tpu.memory_space<vmem>>, vector<2x32xf32>
    tpu.vector_store %arg9[%c0_94, %c0_95], %317 {strides = array<i32>} : memref<2x32xf32, #tpu.memory_space<vmem>>, vector<2x32xf32>,
    %c0_96 = arith.constant 0 : index
    %c0_97 = arith.constant 0 : index
    %319 = vector.load %arg10[%c0_96, %c0_97] : memref<2x32xf32, #tpu.memory_space<vmem>>, vector<2x32xf32>
    tpu.vector_store %arg10[%c0_96, %c0_97], %315 {strides = array<i32>} : memref<2x32xf32, #tpu.memory_space<vmem>>, vector<2x32xf32>,
    %c5_i32_98 = arith.constant 5 : i32
    %c0_99 = arith.constant 0 : index
    %c0_100 = arith.constant 0 : index
    %320 = vector.load %arg9[%c0_99, %c0_100] : memref<2x32xf32, #tpu.memory_space<vmem>>, vector<2x32xf32>
    %c0_101 = arith.constant 0 : index
    %c0_102 = arith.constant 0 : index
    %321 = vector.load %arg10[%c0_101, %c0_102] : memref<2x32xf32, #tpu.memory_space<vmem>>, vector<2x32xf32>
    %322 = arith.index_cast %c5_i32_98 : i32 to index
    %c0_103 = arith.constant 0 : index
    %c0_104 = arith.constant 0 : index
    %323 = vector.load %arg8[%322, %c0_103, %c0_104] : memref<8x2x128xf32, #tpu.memory_space<vmem>>, vector<1x2x128xf32>
    %324 = vector.shape_cast %323 : vector<1x2x128xf32> to vector<2x128xf32>
    %cst_105 = arith.constant dense<0.000000e+00> : vector<2x128xf32>
    %325 = tpu.matmul %320, %184, %cst_105 {dimension_numbers = #tpu.dot_dimension_numbers<[1], [0], [0], [1], [0, 0, 1, 1], [], []>} : vector<2x32xf32>, vector<32x128xf32>, vector<2x128xf32> -> vector<2x128xf32>
    %326 = arith.addf %324, %325 : vector<2x128xf32>
    %327 = math.tanh %326 : vector<2x128xf32>
    %328 = arith.negf %326 : vector<2x128xf32>
    %329 = math.exp %328 : vector<2x128xf32>
    %cst_106 = arith.constant 1.000000e+00 : f32
    %330 = vector.broadcast %cst_106 : f32 to vector<2x128xf32>
    %331 = arith.addf %330, %329 : vector<2x128xf32>
    %332 = arith.divf %330, %331 : vector<2x128xf32>
    %333 = arith.select %190, %327, %332 : vector<2x128xi1>, vector<2x128xf32>
    %334 = vector.extract_strided_slice %333 {offsets = [0, 0], sizes = [2, 32], strides = [1, 1]} : vector<2x128xf32> to vector<2x32xf32>
    %335 = vector.extract_strided_slice %333 {offsets = [0, 32], sizes = [2, 32], strides = [1, 1]} : vector<2x128xf32> to vector<2x32xf32>
    %336 = vector.extract_strided_slice %333 {offsets = [0, 64], sizes = [2, 32], strides = [1, 1]} : vector<2x128xf32> to vector<2x32xf32>
    %337 = vector.extract_strided_slice %333 {offsets = [0, 96], sizes = [2, 32], strides = [1, 1]} : vector<2x128xf32> to vector<2x32xf32>
    %338 = arith.mulf %335, %321 : vector<2x32xf32>
    %339 = arith.mulf %334, %336 : vector<2x32xf32>
    %340 = arith.addf %338, %339 : vector<2x32xf32>
    %341 = math.tanh %340 : vector<2x32xf32>
    %342 = arith.mulf %337, %341 : vector<2x32xf32>
    %c0_107 = arith.constant 0 : index
    %c0_108 = arith.constant 0 : index
    %343 = vector.load %arg9[%c0_107, %c0_108] : memref<2x32xf32, #tpu.memory_space<vmem>>, vector<2x32xf32>
    tpu.vector_store %arg9[%c0_107, %c0_108], %342 {strides = array<i32>} : memref<2x32xf32, #tpu.memory_space<vmem>>, vector<2x32xf32>,
    %c0_109 = arith.constant 0 : index
    %c0_110 = arith.constant 0 : index
    %344 = vector.load %arg10[%c0_109, %c0_110] : memref<2x32xf32, #tpu.memory_space<vmem>>, vector<2x32xf32>
    tpu.vector_store %arg10[%c0_109, %c0_110], %340 {strides = array<i32>} : memref<2x32xf32, #tpu.memory_space<vmem>>, vector<2x32xf32>,
    %c6_i32_111 = arith.constant 6 : i32
    %c0_112 = arith.constant 0 : index
    %c0_113 = arith.constant 0 : index
    %345 = vector.load %arg9[%c0_112, %c0_113] : memref<2x32xf32, #tpu.memory_space<vmem>>, vector<2x32xf32>
    %c0_114 = arith.constant 0 : index
    %c0_115 = arith.constant 0 : index
    %346 = vector.load %arg10[%c0_114, %c0_115] : memref<2x32xf32, #tpu.memory_space<vmem>>, vector<2x32xf32>
    %347 = arith.index_cast %c6_i32_111 : i32 to index
    %c0_116 = arith.constant 0 : index
    %c0_117 = arith.constant 0 : index
    %348 = vector.load %arg8[%347, %c0_116, %c0_117] : memref<8x2x128xf32, #tpu.memory_space<vmem>>, vector<1x2x128xf32>
    %349 = vector.shape_cast %348 : vector<1x2x128xf32> to vector<2x128xf32>
    %cst_118 = arith.constant dense<0.000000e+00> : vector<2x128xf32>
    %350 = tpu.matmul %345, %184, %cst_118 {dimension_numbers = #tpu.dot_dimension_numbers<[1], [0], [0], [1], [0, 0, 1, 1], [], []>} : vector<2x32xf32>, vector<32x128xf32>, vector<2x128xf32> -> vector<2x128xf32>
    %351 = arith.addf %349, %350 : vector<2x128xf32>
    %352 = math.tanh %351 : vector<2x128xf32>
    %353 = arith.negf %351 : vector<2x128xf32>
    %354 = math.exp %353 : vector<2x128xf32>
    %cst_119 = arith.constant 1.000000e+00 : f32
    %355 = vector.broadcast %cst_119 : f32 to vector<2x128xf32>
    %356 = arith.addf %355, %354 : vector<2x128xf32>
    %357 = arith.divf %355, %356 : vector<2x128xf32>
    %358 = arith.select %190, %352, %357 : vector<2x128xi1>, vector<2x128xf32>
    %359 = vector.extract_strided_slice %358 {offsets = [0, 0], sizes = [2, 32], strides = [1, 1]} : vector<2x128xf32> to vector<2x32xf32>
    %360 = vector.extract_strided_slice %358 {offsets = [0, 32], sizes = [2, 32], strides = [1, 1]} : vector<2x128xf32> to vector<2x32xf32>
    %361 = vector.extract_strided_slice %358 {offsets = [0, 64], sizes = [2, 32], strides = [1, 1]} : vector<2x128xf32> to vector<2x32xf32>
    %362 = vector.extract_strided_slice %358 {offsets = [0, 96], sizes = [2, 32], strides = [1, 1]} : vector<2x128xf32> to vector<2x32xf32>
    %363 = arith.mulf %360, %346 : vector<2x32xf32>
    %364 = arith.mulf %359, %361 : vector<2x32xf32>
    %365 = arith.addf %363, %364 : vector<2x32xf32>
    %366 = math.tanh %365 : vector<2x32xf32>
    %367 = arith.mulf %362, %366 : vector<2x32xf32>
    %c0_120 = arith.constant 0 : index
    %c0_121 = arith.constant 0 : index
    %368 = vector.load %arg9[%c0_120, %c0_121] : memref<2x32xf32, #tpu.memory_space<vmem>>, vector<2x32xf32>
    tpu.vector_store %arg9[%c0_120, %c0_121], %367 {strides = array<i32>} : memref<2x32xf32, #tpu.memory_space<vmem>>, vector<2x32xf32>,
    %c0_122 = arith.constant 0 : index
    %c0_123 = arith.constant 0 : index
    %369 = vector.load %arg10[%c0_122, %c0_123] : memref<2x32xf32, #tpu.memory_space<vmem>>, vector<2x32xf32>
    tpu.vector_store %arg10[%c0_122, %c0_123], %365 {strides = array<i32>} : memref<2x32xf32, #tpu.memory_space<vmem>>, vector<2x32xf32>,
    %c7_i32_124 = arith.constant 7 : i32
    %c0_125 = arith.constant 0 : index
    %c0_126 = arith.constant 0 : index
    %370 = vector.load %arg9[%c0_125, %c0_126] : memref<2x32xf32, #tpu.memory_space<vmem>>, vector<2x32xf32>
    %c0_127 = arith.constant 0 : index
    %c0_128 = arith.constant 0 : index
    %371 = vector.load %arg10[%c0_127, %c0_128] : memref<2x32xf32, #tpu.memory_space<vmem>>, vector<2x32xf32>
    %372 = arith.index_cast %c7_i32_124 : i32 to index
    %c0_129 = arith.constant 0 : index
    %c0_130 = arith.constant 0 : index
    %373 = vector.load %arg8[%372, %c0_129, %c0_130] : memref<8x2x128xf32, #tpu.memory_space<vmem>>, vector<1x2x128xf32>
    %374 = vector.shape_cast %373 : vector<1x2x128xf32> to vector<2x128xf32>
    %cst_131 = arith.constant dense<0.000000e+00> : vector<2x128xf32>
    %375 = tpu.matmul %370, %184, %cst_131 {dimension_numbers = #tpu.dot_dimension_numbers<[1], [0], [0], [1], [0, 0, 1, 1], [], []>} : vector<2x32xf32>, vector<32x128xf32>, vector<2x128xf32> -> vector<2x128xf32>
    %376 = arith.addf %374, %375 : vector<2x128xf32>
    %377 = math.tanh %376 : vector<2x128xf32>
    %378 = arith.negf %376 : vector<2x128xf32>
    %379 = math.exp %378 : vector<2x128xf32>
    %cst_132 = arith.constant 1.000000e+00 : f32
    %380 = vector.broadcast %cst_132 : f32 to vector<2x128xf32>
    %381 = arith.addf %380, %379 : vector<2x128xf32>
    %382 = arith.divf %380, %381 : vector<2x128xf32>
    %383 = arith.select %190, %377, %382 : vector<2x128xi1>, vector<2x128xf32>
    %384 = vector.extract_strided_slice %383 {offsets = [0, 0], sizes = [2, 32], strides = [1, 1]} : vector<2x128xf32> to vector<2x32xf32>
    %385 = vector.extract_strided_slice %383 {offsets = [0, 32], sizes = [2, 32], strides = [1, 1]} : vector<2x128xf32> to vector<2x32xf32>
    %386 = vector.extract_strided_slice %383 {offsets = [0, 64], sizes = [2, 32], strides = [1, 1]} : vector<2x128xf32> to vector<2x32xf32>
    %387 = vector.extract_strided_slice %383 {offsets = [0, 96], sizes = [2, 32], strides = [1, 1]} : vector<2x128xf32> to vector<2x32xf32>
    %388 = arith.mulf %385, %371 : vector<2x32xf32>
    %389 = arith.mulf %384, %386 : vector<2x32xf32>
    %390 = arith.addf %388, %389 : vector<2x32xf32>
    %391 = math.tanh %390 : vector<2x32xf32>
    %392 = arith.mulf %387, %391 : vector<2x32xf32>
    %c0_133 = arith.constant 0 : index
    %c0_134 = arith.constant 0 : index
    %393 = vector.load %arg9[%c0_133, %c0_134] : memref<2x32xf32, #tpu.memory_space<vmem>>, vector<2x32xf32>
    tpu.vector_store %arg9[%c0_133, %c0_134], %392 {strides = array<i32>} : memref<2x32xf32, #tpu.memory_space<vmem>>, vector<2x32xf32>,
    %c0_135 = arith.constant 0 : index
    %c0_136 = arith.constant 0 : index
    %394 = vector.load %arg10[%c0_135, %c0_136] : memref<2x32xf32, #tpu.memory_space<vmem>>, vector<2x32xf32>
    tpu.vector_store %arg10[%c0_135, %c0_136], %390 {strides = array<i32>} : memref<2x32xf32, #tpu.memory_space<vmem>>, vector<2x32xf32>,
    %c8_i32_137 = arith.constant 8 : i32
    %c0_138 = arith.constant 0 : index
    %c0_139 = arith.constant 0 : index
    %395 = vector.load %arg9[%c0_138, %c0_139] : memref<2x32xf32, #tpu.memory_space<vmem>>, vector<2x32xf32>
    %c0_140 = arith.constant 0 : index
    %c0_141 = arith.constant 0 : index
    %396 = vector.load %arg6[%c0_140, %c0_141] : memref<2x32xf32, #tpu.memory_space<vmem>>, vector<2x32xf32>
    tpu.vector_store %arg6[%c0_140, %c0_141], %395 {strides = array<i32>} : memref<2x32xf32, #tpu.memory_space<vmem>>, vector<2x32xf32>,
    %c0_142 = arith.constant 0 : index
    %c0_143 = arith.constant 0 : index
    %397 = vector.load %arg10[%c0_142, %c0_143] : memref<2x32xf32, #tpu.memory_space<vmem>>, vector<2x32xf32>
    %c0_144 = arith.constant 0 : index
    %c0_145 = arith.constant 0 : index
    %398 = vector.load %arg7[%c0_144, %c0_145] : memref<2x32xf32, #tpu.memory_space<vmem>>, vector<2x32xf32>
    tpu.vector_store %arg7[%c0_144, %c0_145], %397 {strides = array<i32>} : memref<2x32xf32, #tpu.memory_space<vmem>>, vector<2x32xf32>,
    return
  }
  func.func @transform_0(%arg0: i32) -> (i32, i32) {
    %c0_i32 = arith.constant 0 : i32
    %c0_i32_0 = arith.constant 0 : i32
    %c0_i32_1 = arith.constant 0 : i32
    return %c0_i32, %c0_i32_0 : i32, i32
  }
  func.func @transform_1(%arg0: i32) -> (i32, i32) {
    %c0_i32 = arith.constant 0 : i32
    %c0_i32_0 = arith.constant 0 : i32
    %c0_i32_1 = arith.constant 0 : i32
    return %c0_i32, %c0_i32_0 : i32, i32
  }
  func.func @transform_2(%arg0: i32) -> (i32, i32) {
    %c0_i32 = arith.constant 0 : i32
    %c0_i32_0 = arith.constant 0 : i32
    %c0_i32_1 = arith.constant 0 : i32
    return %c0_i32, %c0_i32_0 : i32, i32
  }
  func.func @transform_3(%arg0: i32) -> (i32, i32) {
    %c0_i32 = arith.constant 0 : i32
    %c0_i32_0 = arith.constant 0 : i32
    %c0_i32_1 = arith.constant 0 : i32
    return %c0_i32, %c0_i32_0 : i32, i32
  }
  func.func @transform_4(%arg0: i32) -> (i32, i32) {
    %c0_i32 = arith.constant 0 : i32
    %c0_i32_0 = arith.constant 0 : i32
    %c0_i32_1 = arith.constant 0 : i32
    return %c0_i32, %c0_i32_0 : i32, i32
  }
  func.func @transform_5(%arg0: i32) -> (i32, i32) {
    %c0_i32 = arith.constant 0 : i32
    %c0_i32_0 = arith.constant 0 : i32
    %c0_i32_1 = arith.constant 0 : i32
    return %c0_i32, %c0_i32_0 : i32, i32
  }
  func.func @transform_6(%arg0: i32) -> (i32, i32) {
    %c0_i32 = arith.constant 0 : i32
    %c0_i32_0 = arith.constant 0 : i32
    %c0_i32_1 = arith.constant 0 : i32
    return %c0_i32, %c0_i32_0 : i32, i32
  }
}

</mosaic_0001>

<bundles_post_ra>
// kernel: encoder_forward.1
= control target key start
LH: loop header
LB: loop body
LE: loop exit
PB: predicated region body
PF: predicated region fallthrough
CT: control target
= control target key end

     0   :  { %12 = vsyncpa [#allocation6], 0  ;;  %s2416_s0 = inlined_call_operand.vmem [shape: s32[16,1], index: 0, kind: input, shape index: {}]   ;;  %s2417_s1 = inlined_call_operand.hbm [shape: f32[16,32], index: 1, kind: input, shape index: {}]   ;;  %s2418_s2 = inlined_call_operand.vmem [shape: f32[32,128], index: 2, kind: input, shape index: {}]   ;;  %s2419_s3 = inlined_call_operand.hbm [shape: f32[32,128], index: 3, kind: input, shape index: {}]   ;;  %s2420_s4 = inlined_call_operand.vmem [shape: f32[1,128], index: 4, kind: input, shape index: {}]   ;;  %s2421_s5 = inlined_call_operand.hbm [shape: f32[2,32], index: 5, kind: output, shape index: {0}]   ;;  %s2422_s6 = inlined_call_operand.hbm [shape: f32[2,32], index: 6, kind: output, shape index: {1}]  }
   0x1   :  { %13 = vsyncpa [#allocation9], 0 }
   0x2   :  { %14 = vsyncpa [#allocation7], 0 }
   0x3   :  { %15 = vsyncpa [#allocation12], 0  ;;  %s2029_s21 = smov [#allocation5]   ;;  %s1933_s25 = scalar_lea.hbm %s2417_s1, 256 }
   0x4   :  { %s23_s22 = sshll.u32 %s2029_s21, 4  ;;  %p1934_p0 = scmp.ne.s32.totalorder %s2417_s1, %s1933_s25  ;;  %s24_s22 = int_to_ptr.vmem [resolvable:$true] %s23_s22 }
   0x5   :  { %p1937_p1 = scmp.lt.u32.totalorder %s1933_s25, %s2417_s1 }
   0x7   :  { %p1939_p2 = pnand %p1937_p1, %p1934_p0 }
   0x9   :  { %1942 = shalt.err (!%p1939_p2)
}
   0xa   :  { %s1943_s30 = scalar_lea.vmem %s24_s22, 256  ;;  %p1948_p4 = scmp.lt.s32.totalorder %s24_s22, %s24_s22 }
   0xb   :  { %p1944_p3 = scmp.ne.s32.totalorder %s24_s22, %s1943_s30  ;;  %p1949_p5 = scmp.lt.s32.totalorder %s1943_s30, %s1943_s30 }
   0xd   :  { %p1950_p6 = por %p1949_p5, %p1948_p4 }
   0xf   :  { %p1951_p7 = pnand %p1950_p6, %p1944_p3 }
  0x11   :  { %1954 = shalt.err (!%p1951_p7)
}
  0x12   :  { %s2030_s7 = smov 128   ;;  %s2031_s8 = smov 8  }
  0x13   :  { %29 = dma.hbm_to_vmem [thread:$0]  %s2417_s1, 256, %s24_s22, [#allocation6], %s2030_s7, %s2030_s7, %s2031_s8  }
  0x14   :  { %s2032_s11 = smov [#allocation8]   ;;  %s1955_s15 = scalar_lea.hbm %s2419_s3, 512 }
  0x15   :  { %s37_s12 = sshll.u32 %s2032_s11, 4  ;;  %p1956_p8 = scmp.ne.s32.totalorder %s2419_s3, %s1955_s15  ;;  %s38_s12 = int_to_ptr.vmem [resolvable:$true] %s37_s12 }
  0x16   :  { %p1959_p9 = scmp.lt.u32.totalorder %s1955_s15, %s2419_s3 }
  0x18   :  { %p1961_p10 = pnand %p1959_p9, %p1956_p8 }
  0x1a   :  { %1964 = shalt.err (!%p1961_p10)
}
  0x1b   :  { %s1965_s20 = scalar_lea.vmem %s38_s12, 512  ;;  %p1970_p12 = scmp.lt.s32.totalorder %s38_s12, %s38_s12 }
  0x1c   :  { %p1966_p11 = scmp.ne.s32.totalorder %s38_s12, %s1965_s20  ;;  %p1971_p13 = scmp.lt.s32.totalorder %s1965_s20, %s1965_s20 }
  0x1e   :  { %p1972_p0 = por %p1971_p13, %p1970_p12 }
  0x20   :  { %p1973_p1 = pnand %p1972_p0, %p1966_p11 }
  0x22   :  { %1976 = shalt.err (!%p1973_p1)
}
  0x23   :  { %43 = dma.hbm_to_vmem [thread:$0]  %s2419_s3, 512, %s38_s12, [#allocation9], %s2030_s7, %s2030_s7, %s2031_s8  }
  0x24   :  { %2021 = dma.done.wait [#allocation6], 256  }
  0x25   :  { %2022 = vsyncadd [#allocation6], 4294967040 }
  0x26   :  { %2023 = dma.done.wait [#allocation9], 512  }
  0x27   :  { %2024 = vsyncadd [#allocation9], 4294966784  ;;  %v2033_v0 = vmov 0   ;;  %v2104_v1 = vld [vmem:[%s2416_s0] sm:$0xff]  ;;  %v2109_v2 = vld [vmem:[%s2416_s0 + $0x8] sm:$0xff]  ;;  %v2034_v3 = vmov 0.0  }
  0x28   :  { %1798 = vset.pattern.permute.xlu1 %v2033_v0  ;;  %1787 = vset.pattern.permute.xlu0 %v2033_v0  ;;  %vm104_vm0 = vcmp.eq.s32.totalorder %v2104_v1, 2  ;;  %vm105_vm1 = vcmp.eq.s32.totalorder %v2109_v2, 2  ;;  %vm56_vm2 = vcmp.eq.s32.totalorder %v2104_v1, 0  ;;  %vm80_vm3 = vcmp.eq.s32.totalorder %v2104_v1, 1  ;;  %v440_v52 = vld [vmem:[%s2418_s2] sm:$0xff]  ;;  %v441_v53 = vld [vmem:[%s2418_s2 + $0x8] sm:$0xff] }
  0x29   :  { %v1526_v4 = vsel %vm104_vm0, 1.0, %v2034_v3  ;;  %v1527_v5 = vsel %vm105_vm1, 1.0, %v2034_v3  ;;  %v1522_v6 = vsel %vm56_vm2, 1.0, %v2034_v3  ;;  %v1524_v7 = vsel %vm80_vm3, 1.0, %v2034_v3  ;;  %v442_v55 = vld [vmem:[%s2418_s2 + $0x10] sm:$0xff]  ;;  %v443_v56 = vld [vmem:[%s2418_s2 + $0x18] sm:$0xff] }
  0x2a   :  { %v1799_v8 = vpack.i.bf16 %v1527_v5, %v1526_v4  ;;  %v1788_v9 = vpack.i.bf16 %v1524_v7, %v1522_v6  ;;  %vm128_vm4 = vcmp.eq.s32.totalorder %v2104_v1, 3  ;;  %vm129_vm5 = vcmp.eq.s32.totalorder %v2109_v2, 3  ;;  %v548_v58 = vld [vmem:[#allocation8] sm:$0xff]  ;;  %v549_v59 = vld [vmem:[#allocation8 + $0x8] sm:$0xff]  ;;  %v550_v60 = vld [vmem:[#allocation8 + $0x10] sm:$0xff]  ;;  %s2037_s2 = smov 32  }
  0x2b   :  { %v1528_v10 = vsel %vm128_vm4, 1.0, %v2034_v3  ;;  %v1529_v11 = vsel %vm129_vm5, 1.0, %v2034_v3  ;;  %vm57_vm6 = vcmp.eq.s32.totalorder %v2109_v2, 0  ;;  %vm81_vm7 = vcmp.eq.s32.totalorder %v2109_v2, 1  ;;  %v551_v63 = vld [vmem:[#allocation8 + $0x18] sm:$0xff]  ;;  %s2039_s10 = smov 96  }
  0x2c   :  { %1800 = vperm.xlu1 %1798, %v1799_v8   ;;  %1789 = vperm.xlu0 %1787, %v1788_v9   ;;  %v1804_v12 = vpack.i.bf16 %v1529_v11, %v1528_v10  ;;  %v1523_v13 = vsel %vm57_vm6, 1.0, %v2034_v3  ;;  %v1525_v14 = vsel %vm81_vm7, 1.0, %v2034_v3  ;;  %vm176_vm8 = vcmp.eq.s32.totalorder %v2104_v1, 5  ;;  %v52_v9 = vld [vmem:[#allocation5] sm:$0xff]  ;;  %s2040_s11 = smov [#allocation11]  }
  0x2d   :  { %v1793_v15 = vpack.i.bf16 %v1525_v14, %v1523_v13  ;;  %vm177_vm9 = vcmp.eq.s32.totalorder %v2109_v2, 5  ;;  %v1532_v16 = vsel %vm176_vm8, 1.0, %v2034_v3  ;;  %vm152_vm10 = vcmp.eq.s32.totalorder %v2104_v1, 4  ;;  %s1508_s12 = sshll.u32 %s2040_s11, 4  ;;  %s1509_s12 = int_to_ptr.vmem [resolvable:$true] %s1508_s12 }
  0x2e   :  { %v1533_v17 = vsel %vm177_vm9, 1.0, %v2034_v3  ;;  %vm153_vm11 = vcmp.eq.s32.totalorder %v2109_v2, 4  ;;  %v1530_v18 = vsel %vm152_vm10, 1.0, %v2034_v3  ;;  %vm224_vm12 = vcmp.eq.s32.totalorder %v2104_v1, 7  ;;  %s1977_s13 = scalar_lea.vmem %s1509_s12, 32  ;;  %p1982_p3 = scmp.lt.s32.totalorder %s1509_s12, %s1509_s12 }
  0x2f   :  { %v1531_v19 = vsel %vm153_vm11, 1.0, %v2034_v3  ;;  %vm225_vm13 = vcmp.eq.s32.totalorder %v2109_v2, 7  ;;  %v1814_v20 = vpack.i.bf16 %v1533_v17, %v1532_v16  ;;  %vm200_vm14 = vcmp.eq.s32.totalorder %v2104_v1, 6  ;;  %p1978_p2 = scmp.ne.s32.totalorder %s1509_s12, %s1977_s13  ;;  %p1983_p4 = scmp.lt.s32.totalorder %s1977_s13, %s1977_s13 }
  0x30   :  { %1805 = vperm.xlu1 %1798, %v1804_v12   ;;  %1794 = vperm.xlu0 %1787, %v1793_v15   ;;  %v1809_v21 = vpack.i.bf16 %v1531_v19, %v1530_v18  ;;  %vm201_vm15 = vcmp.eq.s32.totalorder %v2109_v2, 6  ;;  %v1536_v22 = vsel %vm224_vm12, 1.0, %v2034_v3  ;;  %v1537_v23 = vsel %vm225_vm13, 1.0, %v2034_v3 }
  0x31   :  { %v1534_v24 = vsel %vm200_vm14, 1.0, %v2034_v3  ;;  %v1535_v25 = vsel %vm201_vm15, 1.0, %v2034_v3  ;;  %vm272_vm0 = vcmp.eq.s32.totalorder %v2104_v1, 9  ;;  %vm273_vm1 = vcmp.eq.s32.totalorder %v2109_v2, 9  ;;  %p1984_p5 = por %p1983_p4, %p1982_p3 }
  0x32   :  { %vm248_vm2 = vcmp.eq.s32.totalorder %v2104_v1, 8  ;;  %vm249_vm3 = vcmp.eq.s32.totalorder %v2109_v2, 8  ;;  %v1824_v26 = vpack.i.bf16 %v1537_v23, %v1536_v22  ;;  %v1819_v27 = vpack.i.bf16 %v1535_v25, %v1534_v24 }
  0x33   :  { %v1540_v28 = vsel %vm272_vm0, 1.0, %v2034_v3  ;;  %v1541_v29 = vsel %vm273_vm1, 1.0, %v2034_v3  ;;  %v1538_v30 = vsel %vm248_vm2, 1.0, %v2034_v3  ;;  %v1539_v31 = vsel %vm249_vm3, 1.0, %v2034_v3  ;;  %p1985_p6 = pnand %p1984_p5, %p1978_p2 }
  0x34   :  { %1815 = vperm.xlu1 %1798, %v1814_v20   ;;  %1810 = vperm.xlu0 %1787, %v1809_v21   ;;  %vm320_vm4 = vcmp.eq.s32.totalorder %v2104_v1, 11  ;;  %vm321_vm5 = vcmp.eq.s32.totalorder %v2109_v2, 11  ;;  %vm296_vm6 = vcmp.eq.s32.totalorder %v2104_v1, 10  ;;  %vm297_vm7 = vcmp.eq.s32.totalorder %v2109_v2, 10 }
  0x35   :  { %v1834_v32 = vpack.i.bf16 %v1541_v29, %v1540_v28  ;;  %v1829_v33 = vpack.i.bf16 %v1539_v31, %v1538_v30  ;;  %v1544_v34 = vsel %vm320_vm4, 1.0, %v2034_v3  ;;  %v1545_v35 = vsel %vm321_vm5, 1.0, %v2034_v3 }
  0x36   :  { %v1542_v36 = vsel %vm296_vm6, 1.0, %v2034_v3  ;;  %v1543_v37 = vsel %vm297_vm7, 1.0, %v2034_v3  ;;  %vm368_vm8 = vcmp.eq.s32.totalorder %v2104_v1, 13  ;;  %vm369_vm9 = vcmp.eq.s32.totalorder %v2109_v2, 13 }
  0x37   :  { %vm344_vm10 = vcmp.eq.s32.totalorder %v2104_v1, 12  ;;  %vm345_vm11 = vcmp.eq.s32.totalorder %v2109_v2, 12  ;;  %v1844_v38 = vpack.i.bf16 %v1545_v35, %v1544_v34  ;;  %v1839_v39 = vpack.i.bf16 %v1543_v37, %v1542_v36 }
  0x38   :  { %1825 = vperm.xlu1 %1798, %v1824_v26   ;;  %1820 = vperm.xlu0 %1787, %v1819_v27   ;;  %v1548_v40 = vsel %vm368_vm8, 1.0, %v2034_v3  ;;  %v1549_v41 = vsel %vm369_vm9, 1.0, %v2034_v3  ;;  %v1546_v42 = vsel %vm344_vm10, 1.0, %v2034_v3  ;;  %v1547_v43 = vsel %vm345_vm11, 1.0, %v2034_v3 }
  0x39   :  { %vm416_vm12 = vcmp.eq.s32.totalorder %v2104_v1, 15  ;;  %vm417_vm13 = vcmp.eq.s32.totalorder %v2109_v2, 15  ;;  %vm392_vm14 = vcmp.eq.s32.totalorder %v2104_v1, 14  ;;  %vm393_vm15 = vcmp.eq.s32.totalorder %v2109_v2, 14 }
  0x3a   :  { %v1854_v44 = vpack.i.bf16 %v1549_v41, %v1548_v40  ;;  %v1849_v45 = vpack.i.bf16 %v1547_v43, %v1546_v42  ;;  %v1552_v46 = vsel %vm416_vm12, 1.0, %v2034_v3  ;;  %v1553_v47 = vsel %vm417_vm13, 1.0, %v2034_v3 }
  0x3b   :  { %v1550_v48 = vsel %vm392_vm14, 1.0, %v2034_v3  ;;  %v1551_v49 = vsel %vm393_vm15, 1.0, %v2034_v3  ;;  %v1864_v50 = vpack.i.bf16 %v1553_v47, %v1552_v46  ;;  %v1718_v54 = vpack.c.bf16 %v441_v53, %v440_v52 }
  0x3c   :  { %1835 = vperm.xlu1 %1798, %v1834_v32   ;;  %1830 = vperm.xlu0 %1787, %v1829_v33   ;;  %v1859_v51 = vpack.i.bf16 %v1551_v49, %v1550_v48  ;;  %v1722_v57 = vpack.c.bf16 %v443_v56, %v442_v55  ;;  %vm557_vm0 = vcmask 254976   ;;  %v2035_v61 = vmov 0.0|0.0   ;;  %v2234_v56 = vld [vmem:[#allocation5 + $0x8] sm:$0xff] }
  0x3d   :  { %1719 = vmatprep.subr.bf16.mxu0 %v1718_v54  ;;  %1726 = vmatprep.subr.bf16.mxu1 %v2035_v61  ;;  %v2188_v62 = vpack.c.bf16 %v549_v59, %v548_v58  ;;  %vm2036_vm1 = vmmov 0   ;;  %558 = vst.msk [vmem:[#allocation3] sm:$0x3] %vm557_vm0, %v2034_v3  ;;  %559 = vst.msk [vmem:[#allocation4] sm:$0x3] %vm557_vm0, %v2034_v3  ;;  %v2198_v0 = vpack.c.bf16 %v551_v63, %v550_v60  ;;  %vm451_vm2 = vcmask 261120  }
  0x3e   :  { %1721 = vmatpush3.bf16.msra.mxu0 %v1718_v54  ;;  %1638 = vmatprep.mubr.msk.f32.mxu1 %vm2036_vm1, %v2034_v3  ;;  %v72_v4 = vlaneseq }
  0x3f   :  { %1723 = vmatprep.subr.bf16.mxu0 %v1722_v57  ;;  %1728 = vmatpush3.bf16.msra.mxu1 %v2188_v62 }
  0x40   :  { %1845 = vperm.xlu1 %1798, %v1844_v38   ;;  %1840 = vperm.xlu0 %1787, %v1839_v39   ;;  %v2212_v5 = vshrl.u32 %v72_v4, 7 }
  0x41   :  { %1729 = vmatprep.subr.bf16.mxu1 %v2035_v61 }
  0x42   :  { %1725 = vmatpush3.bf16.msra.mxu0 %v1722_v57  ;;  %v74_v6 = vsub.s32 0, %v2212_v5  ;;  %v98_v7 = vsub.s32 1, %v2212_v5  ;;  %v122_v8 = vsub.s32 2, %v2212_v5  ;;  %v146_v15 = vsub.s32 3, %v2212_v5 }
  0x43   :  { %1732 = vmatprep.subr.bf16.mxu0 %v2035_v61  ;;  %1731 = vmatpush3.bf16.msra.mxu1 %v2198_v0  ;;  %v170_v25 = vsub.s32 4, %v2212_v5  ;;  %v194_v29 = vsub.s32 5, %v2212_v5  ;;  %v218_v34 = vsub.s32 6, %v2212_v5 }
  0x44   :  { %1855 = vperm.xlu1 %1798, %v1854_v44   ;;  %1850 = vperm.xlu0 %1787, %v1849_v45   ;;  %v560_v1 = vld [vmem:[#allocation3] sm:$0x3]  ;;  %v561_v2 = vld [vmem:[#allocation4] sm:$0x3]  ;;  %v75_v10 = vrot.slane %v52_v9, %v74_v6  ;;  %v99_v11 = vrot.slane %v52_v9, %v98_v7  ;;  %v123_v13 = vrot.slane %v52_v9, %v122_v8  ;;  %v242_v44 = vsub.s32 7, %v2212_v5 }
  0x45   :  { %1738 = vmatprep.subr.bf16.mxu1 %v2035_v61  ;;  %v147_v23 = vrot.slane %v52_v9, %v146_v15  ;;  %v171_v40 = vrot.slane %v52_v9, %v170_v25  ;;  %v195_v42 = vrot.slane %v52_v9, %v194_v29  ;;  %v219_v49 = vrot.slane %v52_v9, %v218_v34 }
  0x46   :  { %1639 = vmatmul.mubr.msk.f32.vlgmr.msra.gmra.mrb[0].mxu1 %vm451_vm2, %v560_v1  ;;  %v243_v59 = vrot.slane %v52_v9, %v242_v44 }
  0x47   :  { %1740 = vmatpush3.bf16.msra.mxu1 %v2188_v62  ;;  %1660 = vmatprep.mubr.msk.f32.mxu1 %vm2036_vm1, %v2034_v3 }
  0x48   :  { %1865 = vperm.xlu1 %1798, %v1864_v50   ;;  %1860 = vperm.xlu0 %1787, %v1859_v51  }
  0x49   :  { %1741 = vmatprep.subr.bf16.mxu1 %v2035_v61 }
  0x4b   :  { %1743 = vmatpush3.bf16.msra.mxu1 %v2198_v0 }
  0x4c   :  { %646 = vrot.lane.b32.xlu1 %v561_v2, %s2037_s2  ;;  %1750 = vmatprep.subr.bf16.mxu1 %v2035_v61 }
  0xab   :  { %v1801_v12 = vpop.permute.xlu1 %1800  ;;  %v1790_v14 = vpop.permute.xlu0 %1789 }
  0xac   :  { %v1802_v16 = vunpack.i.l.bf16 %v1801_v12  ;;  %v1792_v17 = vunpack.i.h.bf16 %v1790_v14  ;;  %v1791_v18 = vunpack.i.l.bf16 %v1790_v14  ;;  %v1803_v30 = vunpack.i.h.bf16 %v1801_v12 }
  0xad   :  { %v267_v12 = vrot.slane %v2234_v56, %v74_v6  ;;  %v315_v6 = vrot.slane %v2234_v56, %v122_v8  ;;  %v363_v8 = vrot.slane %v2234_v56, %v170_v25  ;;  %v411_v25 = vrot.slane %v2234_v56, %v218_v34 }
  0xae   :  { %v76_v19 = vmul.f32 %v1791_v18, %v75_v10  ;;  %v100_v20 = vmul.f32 %v1792_v17, %v99_v11  ;;  %v124_v21 = vmul.f32 %v1802_v16, %v123_v13  ;;  %v125_v45 = vmul.f32 %v1803_v30, %v123_v13 }
  0xaf   :  { %v1806_v22 = vpop.permute.xlu1 %1805  ;;  %v1795_v24 = vpop.permute.xlu0 %1794 }
  0xb0   :  { %v102_v26 = vadd.f32 %v100_v20, %v76_v19  ;;  %v1807_v27 = vunpack.i.l.bf16 %v1806_v22  ;;  %v1797_v28 = vunpack.i.h.bf16 %v1795_v24  ;;  %v1796_v31 = vunpack.i.l.bf16 %v1795_v24 }
  0xb1   :  { %v1808_v32 = vunpack.i.h.bf16 %v1806_v22 }
  0xb2   :  { %v101_v33 = vmul.f32 %v1797_v28, %v99_v11  ;;  %v126_v35 = vadd.f32 %v124_v21, %v102_v26  ;;  %v148_v36 = vmul.f32 %v1807_v27, %v147_v23  ;;  %v77_v37 = vmul.f32 %v1796_v31, %v75_v10 }
  0xb3   :  { %v1816_v38 = vpop.permute.xlu1 %1815  ;;  %v1811_v39 = vpop.permute.xlu0 %1810  ;;  %v149_v48 = vmul.f32 %v1808_v32, %v147_v23  ;;  %v291_v21 = vrot.slane %v2234_v56, %v98_v7  ;;  %v339_v7 = vrot.slane %v2234_v56, %v146_v15  ;;  %v387_v15 = vrot.slane %v2234_v56, %v194_v29 }
  0xb4   :  { %v1817_v41 = vunpack.i.l.bf16 %v1816_v38  ;;  %v1813_v43 = vunpack.i.h.bf16 %v1811_v39  ;;  %v103_v46 = vadd.f32 %v101_v33, %v77_v37  ;;  %v1812_v47 = vunpack.i.l.bf16 %v1811_v39 }
  0xb5   :  { %v150_v50 = vadd.f32 %v148_v36, %v126_v35  ;;  %v1818_v52 = vunpack.i.h.bf16 %v1816_v38  ;;  %v435_v29 = vrot.slane %v2234_v56, %v242_v44 }
  0xb6   :  { %v127_v51 = vadd.f32 %v125_v45, %v103_v46  ;;  %v172_v53 = vmul.f32 %v1812_v47, %v171_v40  ;;  %v196_v57 = vmul.f32 %v1817_v41, %v195_v42  ;;  %v173_v58 = vmul.f32 %v1813_v43, %v171_v40 }
  0xb7   :  { %v1826_v54 = vpop.permute.xlu1 %1825  ;;  %v1821_v55 = vpop.permute.xlu0 %1820  ;;  %v197_v13 = vmul.f32 %v1818_v52, %v195_v42 }
  0xb8   :  { %v1822_v60 = vunpack.i.l.bf16 %v1821_v55  ;;  %v151_v63 = vadd.f32 %v149_v48, %v127_v51  ;;  %v174_v1 = vadd.f32 %v172_v53, %v150_v50  ;;  %v1827_v2 = vunpack.i.l.bf16 %v1826_v54 }
  0xb9   :  { %v1823_v10 = vunpack.i.h.bf16 %v1821_v55  ;;  %v1828_v16 = vunpack.i.h.bf16 %v1826_v54 }
  0xba   :  { %v220_v11 = vmul.f32 %v1822_v60, %v219_v49  ;;  %v175_v14 = vadd.f32 %v173_v58, %v151_v63  ;;  %v198_v17 = vadd.f32 %v196_v57, %v174_v1  ;;  %v244_v23 = vmul.f32 %v1827_v2, %v243_v59 }
  0xbb   :  { %v1836_v18 = vpop.permute.xlu1 %1835  ;;  %v1831_v19 = vpop.permute.xlu0 %1830  ;;  %v221_v26 = vmul.f32 %v1823_v10, %v219_v49  ;;  %v245_v30 = vmul.f32 %v1828_v16, %v243_v59 }
  0xbc   :  { %v1837_v20 = vunpack.i.l.bf16 %v1836_v18  ;;  %v1833_v9 = vunpack.i.h.bf16 %v1831_v19  ;;  %v1832_v22 = vunpack.i.l.bf16 %v1831_v19  ;;  %v199_v24 = vadd.f32 %v197_v13, %v175_v14 }
  0xbd   :  { %v222_v27 = vadd.f32 %v220_v11, %v198_v17  ;;  %v1838_v32 = vunpack.i.h.bf16 %v1836_v18 }
  0xbe   :  { %v268_v28 = vmul.f32 %v1832_v22, %v267_v12  ;;  %v223_v31 = vadd.f32 %v221_v26, %v199_v24  ;;  %v292_v37 = vmul.f32 %v1837_v20, %v291_v21  ;;  %v269_v38 = vmul.f32 %v1833_v9, %v267_v12 }
  0xbf   :  { %v246_v33 = vadd.f32 %v244_v23, %v222_v27  ;;  %v1846_v35 = vpop.permute.xlu1 %1845  ;;  %v1841_v36 = vpop.permute.xlu0 %1840  ;;  %v293_v46 = vmul.f32 %v1838_v32, %v291_v21  ;;  %v1554_v32 = vld [vmem:[%s2420_s4] ss:$0 sm:$0xff]  ;;  %s2038_s4 = smov 64  }
  0xc0   :  { %v1842_v39 = vunpack.i.l.bf16 %v1841_v36  ;;  %v247_v40 = vadd.f32 %v245_v30, %v223_v31  ;;  %v1847_v42 = vunpack.i.l.bf16 %v1846_v35  ;;  %v1843_v43 = vunpack.i.h.bf16 %v1841_v36 }
  0xc1   :  { %v270_v41 = vadd.f32 %v268_v28, %v246_v33  ;;  %v1848_v48 = vunpack.i.h.bf16 %v1846_v35 }
  0xc2   :  { %v316_v45 = vmul.f32 %v1842_v39, %v315_v6  ;;  %v271_v47 = vadd.f32 %v269_v38, %v247_v40  ;;  %v340_v55 = vmul.f32 %v1847_v42, %v339_v7  ;;  %v317_v58 = vmul.f32 %v1843_v43, %v315_v6 }
  0xc3   :  { %v294_v49 = vadd.f32 %v292_v37, %v270_v41  ;;  %v1856_v50 = vpop.permute.xlu1 %1855  ;;  %v1851_v51 = vpop.permute.xlu0 %1850  ;;  %v341_v63 = vmul.f32 %v1848_v48, %v339_v7  ;;  %v553_v42 = vand.u32 127, %v72_v4 }
  0xc4   :  { %v1857_v52 = vunpack.i.l.bf16 %v1856_v50  ;;  %v1853_v53 = vunpack.i.h.bf16 %v1851_v51  ;;  %v1852_v54 = vunpack.i.l.bf16 %v1851_v51  ;;  %v295_v57 = vadd.f32 %v293_v46, %v271_v47 }
  0xc5   :  { %v318_v59 = vadd.f32 %v316_v45, %v294_v49  ;;  %v1858_v2 = vunpack.i.h.bf16 %v1856_v50  ;;  %vm554_vm3 = vcmp.ge.s32.totalorder %v553_v42, 64  ;;  %vm555_vm4 = vcmp.lt.s32.totalorder %v553_v42, 96 }
  0xc6   :  { %v364_v60 = vmul.f32 %v1852_v54, %v363_v8  ;;  %v319_v1 = vadd.f32 %v317_v58, %v295_v57  ;;  %v388_v13 = vmul.f32 %v1857_v52, %v387_v15  ;;  %v365_v14 = vmul.f32 %v1853_v53, %v363_v8  ;;  %vm2272_vm5 = vmand %vm554_vm3, %vm555_vm4 }
  0xc7   :  { %v342_v10 = vadd.f32 %v340_v55, %v318_v59  ;;  %v1866_v11 = vpop.permute.xlu1 %1865  ;;  %v1861_v12 = vpop.permute.xlu0 %1860  ;;  %v389_v9 = vmul.f32 %v1858_v2, %v387_v15 }
  0xc8   :  { %v1862_v16 = vunpack.i.l.bf16 %v1861_v12  ;;  %v343_v17 = vadd.f32 %v341_v63, %v319_v1  ;;  %v1867_v19 = vunpack.i.l.bf16 %v1866_v11  ;;  %v1863_v20 = vunpack.i.h.bf16 %v1861_v12 }
  0xc9   :  { %v366_v18 = vadd.f32 %v364_v60, %v342_v10  ;;  %v1868_v22 = vunpack.i.h.bf16 %v1866_v11 }
  0xca   :  { %v412_v21 = vmul.f32 %v1862_v16, %v411_v25  ;;  %v367_v34 = vadd.f32 %v365_v14, %v343_v17  ;;  %v413_v26 = vmul.f32 %v1863_v20, %v411_v25  ;;  %v436_v28 = vmul.f32 %v1867_v19, %v435_v29 }
  0xcb   :  { %v390_v23 = vadd.f32 %v388_v13, %v366_v18  ;;  %v437_v6 = vmul.f32 %v1868_v22, %v435_v29  ;;  %v647_v49 = vpop.permute.xlu1 %646 }
  0xcc   :  { %v391_v24 = vadd.f32 %v389_v9, %v367_v34 }
  0xcd   :  { %v414_v27 = vadd.f32 %v412_v21, %v390_v23 }
  0xce   :  { %v415_v30 = vadd.f32 %v413_v26, %v391_v24 }
  0xcf   :  { %v438_v31 = vadd.f32 %v436_v28, %v414_v27 }
  0xd0   :  { %v439_v5 = vadd.f32 %v437_v6, %v415_v30 }
  0xd1   :  { %1627 = vmatprep.mubr.msk.f32.mxu0 %vm451_vm2, %v438_v31 }
  0xd2   :  { %1628 = vmatmul.mubr.msk.f32.vlgmr.msra.gmra.mrb[0].mxu0 %vm451_vm2, %v439_v5 }
  0xd3   :  { %1734 = vmatpush3.bf16.msra.mxu0 %v2188_v62  ;;  %1649 = vmatprep.mubr.msk.f32.mxu0 %vm2036_vm1, %v2034_v3 }
  0xd4   :  { %1735 = vmatprep.subr.bf16.mxu0 %v2035_v61 }
  0xd7   :  { %1737 = vmatpush3.bf16.msra.mxu0 %v2198_v0 }
  0xd8   :  { %1744 = vmatprep.subr.bf16.mxu0 %v2035_v61 }
 0x119   :  { %v632_v44 = vpop.f32.mrb[0].mxu1 }
 0x11a   :  { %v1640_v56 = vpop.f32.mrb[1].mxu1 }
 0x1a5   :  { %v1629_v33 = vpop.f32.mrb[0].mxu0 }
 0x1a6   :  { %v530_v35 = vadd.f32 %v1629_v33, %v1554_v32  ;;  %v524_v36 = vpop.f32.mrb[1].mxu0 }
 0x1a7   :  { %v525_v37 = vadd.f32 %v1554_v32, %v524_v36 }
 0x1a8   :  { %541 = vst [vmem:[#allocation2 + $0x8] ss:$4 sps:$4 sm:$0xff] %v530_v35  }
 0x1a9   :  { %533 = vst [vmem:[#allocation2] ss:$4 sps:$4 sm:$0xff] %v525_v37  }
 0x1b0   :  { %v562_v38 = vld [vmem:[#allocation2] sm:$0x3]  ;;  %v678_v59 = vld [vmem:[#allocation2 + $0x2] sm:$0x3]  ;;  %v794_v26 = vld [vmem:[#allocation2 + $0x4] sm:$0x3] }
 0x1b1   :  { %v636_v7 = vadd.f32 %v632_v44, %v562_v38 }
 0x1b3   :  { %v1558_v39 = vmul.f32 -1.442695, %v636_v7 }
 0x1b5   :  { %1869 = vpow2.f32 %v1558_v39 }
 0x1b6   :  { %1871 = vtanh.f32 %v636_v7 }
 0x1bf   :  { %v1870_v40 = vpop.eup %1869 }
 0x1c0   :  { %v641_v41 = vadd.f32 1.0, %v1870_v40  ;;  %v1872_v45 = vpop.eup %1871 }
 0x1c2   :  { %1873 = vrcp.f32 %v641_v41 }
 0x1cc   :  { %v1874_v8 = vpop.eup %1873 }
 0x1cd   :  { %v644_v46 = vsel %vm2272_vm5, %v1872_v45, %v1874_v8 }
 0x1ce   :  { %651 = vrot.lane.b32.xlu0 %v644_v46, %s2038_s4  ;;  %v649_v4 = vmul.f32 %v647_v49, %v644_v46 }
 0x240   :  { %v652_v47 = vpop.permute.xlu0 %651 }
 0x241   :  { %v654_v48 = vmul.f32 %v652_v47, %v644_v46  ;;  %v910_v47 = vld [vmem:[#allocation2 + $0x6] sm:$0x3] }
 0x243   :  { %656 = vrot.lane.b32.xlu0 %v654_v48, %s2037_s2 }
 0x2b5   :  { %v657_v50 = vpop.permute.xlu0 %656 }
 0x2b6   :  { %v659_v51 = vadd.f32 %v657_v50, %v649_v4 }
 0x2b8   :  { %1875 = vtanh.f32 %v659_v51 }
 0x2c2   :  { %v1876_v52 = vpop.eup %1875 }
 0x2c3   :  { %662 = vrot.lane.b32.xlu1 %v1876_v52, %s2038_s4 }
 0x2c7   :  { %672 = vrot.lane.b32.xlu1 %v659_v51, %s2039_s10 }
 0x335   :  { %v663_v15 = vpop.permute.xlu1 %662 }
 0x336   :  { %v665_v53 = vmul.f32 %v663_v15, %v644_v46 }
 0x338   :  { %667 = vrot.lane.b32.xlu0 %v665_v53, %s2037_s2 }
 0x339   :  { %v673_v54 = vpop.permute.xlu1 %672 }
 0x33a   :  { %675 = vst.msk [vmem:[#allocation4] sm:$0x3] %vm557_vm0, %v673_v54 }
 0x341   :  { %v677_v55 = vld [vmem:[#allocation4] sm:$0x3] }
 0x342   :  { %762 = vrot.lane.b32.xlu1 %v677_v55, %s2037_s2 }
 0x3aa   :  { %v668_v57 = vpop.permute.xlu0 %667 }
 0x3ab   :  { %670 = vst.msk [vmem:[#allocation3] sm:$0x3] %vm557_vm0, %v668_v57 }
 0x3b2   :  { %v676_v58 = vld [vmem:[#allocation3] sm:$0x3] }
 0x3b3   :  { %1650 = vmatmul.mubr.msk.f32.vlgmr.msra.gmra.mrb[2].mxu0 %vm451_vm2, %v676_v58 }
 0x3b4   :  { %1746 = vmatpush3.bf16.msra.mxu0 %v2188_v62  ;;  %1671 = vmatprep.mubr.msk.f32.mxu0 %vm2036_vm1, %v2034_v3  ;;  %v763_v16 = vpop.permute.xlu1 %762 }
 0x3b5   :  { %1747 = vmatprep.subr.bf16.mxu0 %v2035_v61 }
 0x3b8   :  { %1749 = vmatpush3.bf16.msra.mxu0 %v2198_v0 }
 0x3b9   :  { %1756 = vmatprep.subr.bf16.mxu0 %v2035_v61 }
 0x486   :  { %v748_v60 = vpop.f32.mrb[2].mxu0 }
 0x487   :  { %v752_v25 = vadd.f32 %v748_v60, %v678_v59  ;;  %v1651_v63 = vpop.f32.mrb[3].mxu0 }
 0x489   :  { %v1560_v1 = vmul.f32 -1.442695, %v752_v25 }
 0x48b   :  { %1877 = vpow2.f32 %v1560_v1 }
 0x48c   :  { %1879 = vtanh.f32 %v752_v25 }
 0x495   :  { %v1878_v2 = vpop.eup %1877 }
 0x496   :  { %v757_v10 = vadd.f32 1.0, %v1878_v2  ;;  %v1880_v11 = vpop.eup %1879 }
 0x498   :  { %1881 = vrcp.f32 %v757_v10 }
 0x4a2   :  { %v1882_v12 = vpop.eup %1881 }
 0x4a3   :  { %v760_v13 = vsel %vm2272_vm5, %v1880_v11, %v1882_v12 }
 0x4a4   :  { %767 = vrot.lane.b32.xlu0 %v760_v13, %s2038_s4  ;;  %v765_v17 = vmul.f32 %v763_v16, %v760_v13 }
 0x516   :  { %v768_v14 = vpop.permute.xlu0 %767 }
 0x517   :  { %v770_v29 = vmul.f32 %v768_v14, %v760_v13  ;;  %v1026_v14 = vld [vmem:[#allocation2 + $0x8] sm:$0x3] }
 0x519   :  { %772 = vrot.lane.b32.xlu0 %v770_v29, %s2037_s2 }
 0x58b   :  { %v773_v18 = vpop.permute.xlu0 %772 }
 0x58c   :  { %v775_v19 = vadd.f32 %v773_v18, %v765_v17 }
 0x58e   :  { %1883 = vtanh.f32 %v775_v19 }
 0x598   :  { %v1884_v20 = vpop.eup %1883 }
 0x599   :  { %778 = vrot.lane.b32.xlu1 %v1884_v20, %s2038_s4 }
 0x59d   :  { %788 = vrot.lane.b32.xlu1 %v775_v19, %s2039_s10 }
 0x60b   :  { %v779_v21 = vpop.permute.xlu1 %778 }
 0x60c   :  { %v781_v9 = vmul.f32 %v779_v21, %v760_v13 }
 0x60e   :  { %783 = vrot.lane.b32.xlu0 %v781_v9, %s2037_s2 }
 0x60f   :  { %v789_v34 = vpop.permute.xlu1 %788 }
 0x610   :  { %791 = vst.msk [vmem:[#allocation4] sm:$0x3] %vm557_vm0, %v789_v34 }
 0x617   :  { %v793_v22 = vld [vmem:[#allocation4] sm:$0x3] }
 0x618   :  { %878 = vrot.lane.b32.xlu1 %v793_v22, %s2037_s2 }
 0x680   :  { %v784_v23 = vpop.permute.xlu0 %783 }
 0x681   :  { %786 = vst.msk [vmem:[#allocation3] sm:$0x3] %vm557_vm0, %v784_v23 }
 0x688   :  { %v792_v24 = vld [vmem:[#allocation3] sm:$0x3] }
 0x689   :  { %1661 = vmatmul.mubr.msk.f32.vlgmr.msra.gmra.mrb[2].mxu1 %vm451_vm2, %v792_v24 }
 0x68a   :  { %1752 = vmatpush3.bf16.msra.mxu1 %v2188_v62  ;;  %1682 = vmatprep.mubr.msk.f32.mxu1 %vm2036_vm1, %v2034_v3  ;;  %v879_v36 = vpop.permute.xlu1 %878 }
 0x68b   :  { %1753 = vmatprep.subr.bf16.mxu1 %v2035_v61 }
 0x68e   :  { %1755 = vmatpush3.bf16.msra.mxu1 %v2198_v0 }
 0x68f   :  { %1762 = vmatprep.subr.bf16.mxu1 %v2035_v61 }
 0x75c   :  { %v864_v27 = vpop.f32.mrb[2].mxu1 }
 0x75d   :  { %v868_v28 = vadd.f32 %v864_v27, %v794_v26  ;;  %v1662_v6 = vpop.f32.mrb[3].mxu1 }
 0x75f   :  { %v1562_v30 = vmul.f32 -1.442695, %v868_v28 }
 0x761   :  { %1885 = vpow2.f32 %v1562_v30 }
 0x762   :  { %1887 = vtanh.f32 %v868_v28 }
 0x76b   :  { %v1886_v31 = vpop.eup %1885 }
 0x76c   :  { %v873_v5 = vadd.f32 1.0, %v1886_v31  ;;  %v1888_v44 = vpop.eup %1887 }
 0x76e   :  { %1889 = vrcp.f32 %v873_v5 }
 0x778   :  { %v1890_v56 = vpop.eup %1889 }
 0x779   :  { %v876_v32 = vsel %vm2272_vm5, %v1888_v44, %v1890_v56 }
 0x77a   :  { %883 = vrot.lane.b32.xlu0 %v876_v32, %s2038_s4  ;;  %v881_v37 = vmul.f32 %v879_v36, %v876_v32 }
 0x7ec   :  { %v884_v33 = vpop.permute.xlu0 %883 }
 0x7ed   :  { %v886_v35 = vmul.f32 %v884_v33, %v876_v32  ;;  %v1142_v33 = vld [vmem:[#allocation2 + $0xa] sm:$0x3] }
 0x7ef   :  { %888 = vrot.lane.b32.xlu0 %v886_v35, %s2037_s2 }
 0x861   :  { %v889_v38 = vpop.permute.xlu0 %888 }
 0x862   :  { %v891_v7 = vadd.f32 %v889_v38, %v881_v37 }
 0x864   :  { %1891 = vtanh.f32 %v891_v7 }
 0x86e   :  { %v1892_v39 = vpop.eup %1891 }
 0x86f   :  { %894 = vrot.lane.b32.xlu1 %v1892_v39, %s2038_s4 }
 0x873   :  { %904 = vrot.lane.b32.xlu1 %v891_v7, %s2039_s10 }
 0x8e1   :  { %v895_v40 = vpop.permute.xlu1 %894 }
 0x8e2   :  { %v897_v41 = vmul.f32 %v895_v40, %v876_v32 }
 0x8e4   :  { %899 = vrot.lane.b32.xlu0 %v897_v41, %s2037_s2 }
 0x8e5   :  { %v905_v42 = vpop.permute.xlu1 %904 }
 0x8e6   :  { %907 = vst.msk [vmem:[#allocation4] sm:$0x3] %vm557_vm0, %v905_v42 }
 0x8ed   :  { %v909_v45 = vld [vmem:[#allocation4] sm:$0x3] }
 0x8ee   :  { %994 = vrot.lane.b32.xlu1 %v909_v45, %s2037_s2 }
 0x956   :  { %v900_v8 = vpop.permute.xlu0 %899 }
 0x957   :  { %902 = vst.msk [vmem:[#allocation3] sm:$0x3] %vm557_vm0, %v900_v8 }
 0x95e   :  { %v908_v46 = vld [vmem:[#allocation3] sm:$0x3] }
 0x95f   :  { %1672 = vmatmul.mubr.msk.f32.vlgmr.msra.gmra.mrb[4].mxu0 %vm451_vm2, %v908_v46 }
 0x960   :  { %1758 = vmatpush3.bf16.msra.mxu0 %v2188_v62  ;;  %1693 = vmatprep.mubr.msk.f32.mxu0 %vm2036_vm1, %v2034_v3  ;;  %v995_v58 = vpop.permute.xlu1 %994 }
 0x961   :  { %1759 = vmatprep.subr.bf16.mxu0 %v2035_v61 }
 0x964   :  { %1761 = vmatpush3.bf16.msra.mxu0 %v2198_v0 }
 0x965   :  { %1768 = vmatprep.subr.bf16.mxu0 %v2035_v61 }
 0xa32   :  { %v980_v48 = vpop.f32.mrb[4].mxu0 }
 0xa33   :  { %v984_v49 = vadd.f32 %v980_v48, %v910_v47  ;;  %v1673_v4 = vpop.f32.mrb[5].mxu0 }
 0xa35   :  { %v1564_v50 = vmul.f32 -1.442695, %v984_v49 }
 0xa37   :  { %1893 = vpow2.f32 %v1564_v50 }
 0xa38   :  { %1895 = vtanh.f32 %v984_v49 }
 0xa41   :  { %v1894_v51 = vpop.eup %1893 }
 0xa42   :  { %v989_v52 = vadd.f32 1.0, %v1894_v51  ;;  %v1896_v15 = vpop.eup %1895 }
 0xa44   :  { %1897 = vrcp.f32 %v989_v52  ;;  %v1258_v52 = vld [vmem:[#allocation2 + $0xc] sm:$0x3] }
 0xa4e   :  { %v1898_v53 = vpop.eup %1897 }
 0xa4f   :  { %v992_v54 = vsel %vm2272_vm5, %v1896_v15, %v1898_v53 }
 0xa50   :  { %999 = vrot.lane.b32.xlu0 %v992_v54, %s2038_s4  ;;  %v997_v59 = vmul.f32 %v995_v58, %v992_v54 }
 0xac2   :  { %v1000_v55 = vpop.permute.xlu0 %999 }
 0xac3   :  { %v1002_v57 = vmul.f32 %v1000_v55, %v992_v54 }
 0xac5   :  { %1004 = vrot.lane.b32.xlu0 %v1002_v57, %s2037_s2 }
 0xb37   :  { %v1005_v60 = vpop.permute.xlu0 %1004 }
 0xb38   :  { %v1007_v25 = vadd.f32 %v1005_v60, %v997_v59 }
 0xb3a   :  { %1899 = vtanh.f32 %v1007_v25 }
 0xb44   :  { %v1900_v63 = vpop.eup %1899 }
 0xb45   :  { %1010 = vrot.lane.b32.xlu1 %v1900_v63, %s2038_s4 }
 0xb49   :  { %1020 = vrot.lane.b32.xlu1 %v1007_v25, %s2039_s10 }
 0xbb7   :  { %v1011_v1 = vpop.permute.xlu1 %1010 }
 0xbb8   :  { %v1013_v2 = vmul.f32 %v1011_v1, %v992_v54 }
 0xbba   :  { %1015 = vrot.lane.b32.xlu0 %v1013_v2, %s2037_s2 }
 0xbbb   :  { %v1021_v10 = vpop.permute.xlu1 %1020 }
 0xbbc   :  { %1023 = vst.msk [vmem:[#allocation4] sm:$0x3] %vm557_vm0, %v1021_v10 }
 0xbc3   :  { %v1025_v11 = vld [vmem:[#allocation4] sm:$0x3] }
 0xbc4   :  { %1110 = vrot.lane.b32.xlu1 %v1025_v11, %s2037_s2 }
 0xc2c   :  { %v1016_v12 = vpop.permute.xlu0 %1015 }
 0xc2d   :  { %1018 = vst.msk [vmem:[#allocation3] sm:$0x3] %vm557_vm0, %v1016_v12 }
 0xc34   :  { %v1024_v13 = vld [vmem:[#allocation3] sm:$0x3] }
 0xc35   :  { %1683 = vmatmul.mubr.msk.f32.vlgmr.msra.gmra.mrb[4].mxu1 %vm451_vm2, %v1024_v13 }
 0xc36   :  { %1764 = vmatpush3.bf16.msra.mxu1 %v2188_v62  ;;  %1704 = vmatprep.mubr.msk.f32.mxu1 %vm2036_vm1, %v2034_v3  ;;  %v1111_v24 = vpop.permute.xlu1 %1110 }
 0xc37   :  { %1765 = vmatprep.subr.bf16.mxu1 %v2035_v61 }
 0xc3a   :  { %1767 = vmatpush3.bf16.msra.mxu1 %v2198_v0 }
 0xd08   :  { %v1096_v29 = vpop.f32.mrb[4].mxu1 }
 0xd09   :  { %v1100_v16 = vadd.f32 %v1096_v29, %v1026_v14  ;;  %v1684_v17 = vpop.f32.mrb[5].mxu1 }
 0xd0b   :  { %v1566_v18 = vmul.f32 -1.442695, %v1100_v16 }
 0xd0d   :  { %1901 = vpow2.f32 %v1566_v18 }
 0xd0e   :  { %1903 = vtanh.f32 %v1100_v16 }
 0xd17   :  { %v1902_v19 = vpop.eup %1901 }
 0xd18   :  { %v1105_v20 = vadd.f32 1.0, %v1902_v19  ;;  %v1904_v21 = vpop.eup %1903 }
 0xd1a   :  { %1905 = vrcp.f32 %v1105_v20  ;;  %v1374_v20 = vld [vmem:[#allocation2 + $0xe] sm:$0x3] }
 0xd24   :  { %v1906_v9 = vpop.eup %1905 }
 0xd25   :  { %v1108_v34 = vsel %vm2272_vm5, %v1904_v21, %v1906_v9 }
 0xd26   :  { %1115 = vrot.lane.b32.xlu0 %v1108_v34, %s2038_s4  ;;  %v1113_v26 = vmul.f32 %v1111_v24, %v1108_v34 }
 0xd98   :  { %v1116_v22 = vpop.permute.xlu0 %1115 }
 0xd99   :  { %v1118_v23 = vmul.f32 %v1116_v22, %v1108_v34 }
 0xd9b   :  { %1120 = vrot.lane.b32.xlu0 %v1118_v23, %s2037_s2 }
 0xe0d   :  { %v1121_v27 = vpop.permute.xlu0 %1120 }
 0xe0e   :  { %v1123_v28 = vadd.f32 %v1121_v27, %v1113_v26 }
 0xe10   :  { %1907 = vtanh.f32 %v1123_v28 }
 0xe1a   :  { %v1908_v6 = vpop.eup %1907 }
 0xe1b   :  { %1126 = vrot.lane.b32.xlu1 %v1908_v6, %s2038_s4 }
 0xe1f   :  { %1136 = vrot.lane.b32.xlu1 %v1123_v28, %s2039_s10 }
 0xe8d   :  { %v1127_v30 = vpop.permute.xlu1 %1126 }
 0xe8e   :  { %v1129_v31 = vmul.f32 %v1127_v30, %v1108_v34 }
 0xe90   :  { %1131 = vrot.lane.b32.xlu0 %v1129_v31, %s2037_s2 }
 0xe91   :  { %v1137_v5 = vpop.permute.xlu1 %1136 }
 0xe92   :  { %1139 = vst.msk [vmem:[#allocation4] sm:$0x3] %vm557_vm0, %v1137_v5 }
 0xe99   :  { %v1141_v44 = vld [vmem:[#allocation4] sm:$0x3] }
 0xe9a   :  { %1226 = vrot.lane.b32.xlu1 %v1141_v44, %s2037_s2 }
 0xf02   :  { %v1132_v56 = vpop.permute.xlu0 %1131 }
 0xf03   :  { %1134 = vst.msk [vmem:[#allocation3] sm:$0x3] %vm557_vm0, %v1132_v56 }
 0xf0a   :  { %v1140_v32 = vld [vmem:[#allocation3] sm:$0x3] }
 0xf0b   :  { %1694 = vmatmul.mubr.msk.f32.vlgmr.msra.gmra.mrb[6].mxu0 %vm451_vm2, %v1140_v32 }
 0xf0c   :  { %1770 = vmatpush3.bf16.msra.mxu0 %v2188_v62  ;;  %1715 = vmatprep.mubr.msk.f32.mxu0 %vm2036_vm1, %v2034_v3 }
 0xf0d   :  { %1771 = vmatprep.subr.bf16.mxu0 %v2035_v61 }
 0xf10   :  { %1773 = vmatpush3.bf16.msra.mxu0 %v2198_v0  ;;  %v1227_v0 = vpop.permute.xlu1 %1226 }
 0xfde   :  { %v1212_v35 = vpop.f32.mrb[6].mxu0 }
 0xfdf   :  { %v1216_v36 = vadd.f32 %v1212_v35, %v1142_v33  ;;  %v1695_v37 = vpop.f32.mrb[7].mxu0 }
 0xfe1   :  { %v1568_v38 = vmul.f32 -1.442695, %v1216_v36 }
 0xfe3   :  { %1909 = vpow2.f32 %v1568_v38 }
 0xfe4   :  { %1911 = vtanh.f32 %v1216_v36 }
 0xfed   :  { %v1910_v7 = vpop.eup %1909 }
 0xfee   :  { %v1221_v39 = vadd.f32 1.0, %v1910_v7  ;;  %v1912_v40 = vpop.eup %1911 }
 0xff0   :  { %1913 = vrcp.f32 %v1221_v39 }
 0xffa   :  { %v1914_v41 = vpop.eup %1913 }
 0xffb   :  { %v1224_v62 = vsel %vm2272_vm5, %v1912_v40, %v1914_v41 }
 0xffc   :  { %1231 = vrot.lane.b32.xlu0 %v1224_v62, %s2038_s4  ;;  %v1229_v42 = vmul.f32 %v1227_v0, %v1224_v62 }
0x106e   :  { %v1232_v3 = vpop.permute.xlu0 %1231 }
0x106f   :  { %v1234_v61 = vmul.f32 %v1232_v3, %v1224_v62 }
0x1071   :  { %1236 = vrot.lane.b32.xlu0 %v1234_v61, %s2037_s2 }
0x10e3   :  { %v1237_v45 = vpop.permute.xlu0 %1236 }
0x10e4   :  { %v1239_v8 = vadd.f32 %v1237_v45, %v1229_v42 }
0x10e6   :  { %1915 = vtanh.f32 %v1239_v8 }
0x10f0   :  { %v1916_v46 = vpop.eup %1915 }
0x10f1   :  { %1242 = vrot.lane.b32.xlu1 %v1916_v46, %s2038_s4 }
0x10f5   :  { %1252 = vrot.lane.b32.xlu1 %v1239_v8, %s2039_s10 }
0x1163   :  { %v1243_v47 = vpop.permute.xlu1 %1242 }
0x1164   :  { %v1245_v48 = vmul.f32 %v1243_v47, %v1224_v62 }
0x1166   :  { %1247 = vrot.lane.b32.xlu0 %v1245_v48, %s2037_s2 }
0x1167   :  { %v1253_v49 = vpop.permute.xlu1 %1252 }
0x1168   :  { %1255 = vst.msk [vmem:[#allocation4] sm:$0x3] %vm557_vm0, %v1253_v49 }
0x116f   :  { %v1257_v4 = vld [vmem:[#allocation4] sm:$0x3] }
0x1170   :  { %1342 = vrot.lane.b32.xlu1 %v1257_v4, %s2037_s2 }
0x11d8   :  { %v1248_v50 = vpop.permute.xlu0 %1247 }
0x11d9   :  { %1250 = vst.msk [vmem:[#allocation3] sm:$0x3] %vm557_vm0, %v1248_v50 }
0x11e0   :  { %v1256_v51 = vld [vmem:[#allocation3] sm:$0x3] }
0x11e1   :  { %1705 = vmatmul.mubr.msk.f32.vlgmr.msra.gmra.mrb[6].mxu1 %vm451_vm2, %v1256_v51 }
0x11e2   :  { %v1343_v2 = vpop.permute.xlu1 %1342 }
0x12b4   :  { %v1328_v15 = vpop.f32.mrb[6].mxu1 }
0x12b5   :  { %v1332_v53 = vadd.f32 %v1328_v15, %v1258_v52  ;;  %v1706_v54 = vpop.f32.mrb[7].mxu1 }
0x12b7   :  { %v1570_v55 = vmul.f32 -1.442695, %v1332_v53 }
0x12b9   :  { %1917 = vpow2.f32 %v1570_v55 }
0x12ba   :  { %1919 = vtanh.f32 %v1332_v53 }
0x12c3   :  { %v1918_v57 = vpop.eup %1917 }
0x12c4   :  { %v1337_v58 = vadd.f32 1.0, %v1918_v57  ;;  %v1920_v59 = vpop.eup %1919 }
0x12c6   :  { %1921 = vrcp.f32 %v1337_v58 }
0x12d0   :  { %v1922_v60 = vpop.eup %1921 }
0x12d1   :  { %v1340_v25 = vsel %vm2272_vm5, %v1920_v59, %v1922_v60 }
0x12d2   :  { %1347 = vrot.lane.b32.xlu0 %v1340_v25, %s2038_s4  ;;  %v1345_v10 = vmul.f32 %v1343_v2, %v1340_v25 }
0x1344   :  { %v1348_v63 = vpop.permute.xlu0 %1347 }
0x1345   :  { %v1350_v1 = vmul.f32 %v1348_v63, %v1340_v25 }
0x1347   :  { %1352 = vrot.lane.b32.xlu0 %v1350_v1, %s2037_s2 }
0x13b9   :  { %v1353_v11 = vpop.permute.xlu0 %1352 }
0x13ba   :  { %v1355_v12 = vadd.f32 %v1353_v11, %v1345_v10 }
0x13bc   :  { %1923 = vtanh.f32 %v1355_v12 }
0x13c6   :  { %v1924_v13 = vpop.eup %1923 }
0x13c7   :  { %1358 = vrot.lane.b32.xlu1 %v1924_v13, %s2038_s4 }
0x13cb   :  { %1368 = vrot.lane.b32.xlu1 %v1355_v12, %s2039_s10 }
0x1439   :  { %v1359_v14 = vpop.permute.xlu1 %1358 }
0x143a   :  { %v1361_v29 = vmul.f32 %v1359_v14, %v1340_v25 }
0x143c   :  { %1363 = vrot.lane.b32.xlu0 %v1361_v29, %s2037_s2 }
0x143d   :  { %v1369_v16 = vpop.permute.xlu1 %1368 }
0x143e   :  { %1371 = vst.msk [vmem:[#allocation4] sm:$0x3] %vm557_vm0, %v1369_v16 }
0x1445   :  { %v1373_v17 = vld [vmem:[#allocation4] sm:$0x3] }
0x1446   :  { %1458 = vrot.lane.b32.xlu1 %v1373_v17, %s2037_s2 }
0x14ae   :  { %v1364_v18 = vpop.permute.xlu0 %1363 }
0x14af   :  { %1366 = vst.msk [vmem:[#allocation3] sm:$0x3] %vm557_vm0, %v1364_v18 }
0x14b6   :  { %v1372_v19 = vld [vmem:[#allocation3] sm:$0x3] }
0x14b7   :  { %1716 = vmatmul.mubr.msk.f32.vlgmr.msra.gmra.mrb[8].mxu0 %vm451_vm2, %v1372_v19 }
0x14b8   :  { %v1459_v31 = vpop.permute.xlu1 %1458 }
0x158a   :  { %v1444_v21 = vpop.f32.mrb[8].mxu0 }
0x158b   :  { %v1448_v9 = vadd.f32 %v1444_v21, %v1374_v20  ;;  %v1717_v34 = vpop.f32.mrb[9].mxu0 }
0x158d   :  { %v1572_v22 = vmul.f32 -1.442695, %v1448_v9 }
0x158f   :  { %1925 = vpow2.f32 %v1572_v22 }
0x1590   :  { %1927 = vtanh.f32 %v1448_v9 }
0x1599   :  { %v1926_v23 = vpop.eup %1925 }
0x159a   :  { %v1453_v24 = vadd.f32 1.0, %v1926_v23  ;;  %v1928_v26 = vpop.eup %1927 }
0x159c   :  { %1929 = vrcp.f32 %v1453_v24 }
0x15a6   :  { %v1930_v27 = vpop.eup %1929 }
0x15a7   :  { %v1456_v28 = vsel %vm2272_vm5, %v1928_v26, %v1930_v27 }
0x15a8   :  { %1463 = vrot.lane.b32.xlu0 %v1456_v28, %s2038_s4  ;;  %v1461_v5 = vmul.f32 %v1459_v31, %v1456_v28 }
0x161a   :  { %v1464_v6 = vpop.permute.xlu0 %1463 }
0x161b   :  { %v1466_v30 = vmul.f32 %v1464_v6, %v1456_v28 }
0x161d   :  { %1468 = vrot.lane.b32.xlu0 %v1466_v30, %s2037_s2 }
0x168f   :  { %v1469_v44 = vpop.permute.xlu0 %1468 }
0x1690   :  { %v1471_v56 = vadd.f32 %v1469_v44, %v1461_v5 }
0x1692   :  { %1931 = vtanh.f32 %v1471_v56 }
0x169c   :  { %v1932_v32 = vpop.eup %1931 }
0x169d   :  { %1474 = vrot.lane.b32.xlu1 %v1932_v32, %s2038_s4 }
0x16a1   :  { %1484 = vrot.lane.b32.xlu1 %v1471_v56, %s2039_s10 }
0x170f   :  { %v1475_v33 = vpop.permute.xlu1 %1474 }
0x1710   :  { %v1477_v35 = vmul.f32 %v1475_v33, %v1456_v28 }
0x1712   :  { %1479 = vrot.lane.b32.xlu0 %v1477_v35, %s2037_s2 }
0x1713   :  { %v1485_v43 = vpop.permute.xlu1 %1484 }
0x1714   :  { %1487 = vst.msk [vmem:[#allocation4] sm:$0x3] %vm557_vm0, %v1485_v43 }
0x171b   :  { %v1490_v36 = vld [vmem:[#allocation4] sm:$0x3] }
0x171c   :  { %1491 = vst.msk [vmem:[#allocation11] sm:$0x3] %vm557_vm0, %v1490_v36 }
0x171d   :  { %1988 = shalt.err (!%p1985_p6)
}
0x171e   :  { %s1989_s16 = scalar_lea.hbm %s2422_s6, 32 }
0x171f   :  { %p1990_p7 = scmp.ne.s32.totalorder %s2422_s6, %s1989_s16  ;;  %p1993_p8 = scmp.lt.u32.totalorder %s1989_s16, %s2422_s6 }
0x1721   :  { %p1995_p9 = pnand %p1993_p8, %p1990_p7 }
0x1723   :  { %1998 = shalt.err (!%p1995_p9)
}
0x1724   :  { %1511 = dma.vmem_to_hbm [thread:$0]  %s1509_s12, 32, %s2422_s6, [#allocation12]  }
0x1725   :  { %s2041_s22 = smov [#allocation10]  }
0x1726   :  { %s1498_s23 = sshll.u32 %s2041_s22, 4  ;;  %s1499_s23 = int_to_ptr.vmem [resolvable:$true] %s1498_s23 }
0x1727   :  { %s1999_s24 = scalar_lea.vmem %s1499_s23, 32  ;;  %p2004_p11 = scmp.lt.s32.totalorder %s1499_s23, %s1499_s23 }
0x1728   :  { %p2000_p10 = scmp.ne.s32.totalorder %s1499_s23, %s1999_s24  ;;  %p2005_p12 = scmp.lt.s32.totalorder %s1999_s24, %s1999_s24 }
0x172a   :  { %p2006_p13 = por %p2005_p12, %p2004_p11 }
0x172c   :  { %p2007_p0 = pnand %p2006_p13, %p2000_p10 }
0x1784   :  { %v1480_v37 = vpop.permute.xlu0 %1479 }
0x1785   :  { %1482 = vst.msk [vmem:[#allocation3] sm:$0x3] %vm557_vm0, %v1480_v37 }
0x178c   :  { %v1488_v38 = vld [vmem:[#allocation3] sm:$0x3] }
0x178d   :  { %1489 = vst.msk [vmem:[#allocation10] sm:$0x3] %vm557_vm0, %v1488_v38 }
0x178e   :  { %2010 = shalt.err (!%p2007_p0)
}
0x178f   :  { %s2011_s6 = scalar_lea.hbm %s2421_s5, 32 }
0x1790   :  { %p2012_p1 = scmp.ne.s32.totalorder %s2421_s5, %s2011_s6  ;;  %p2015_p2 = scmp.lt.u32.totalorder %s2011_s6, %s2421_s5 }
0x1792   :  { %p2017_p3 = pnand %p2015_p2, %p2012_p1 }
0x1794   :  { %2020 = shalt.err (!%p2017_p3)
}
0x1795   :  { %1501 = dma.vmem_to_hbm [thread:$0]  %s1499_s23, 32, %s2421_s5, [#allocation7]  }
0x1796   :  { %2025 = dma.done.wait [#allocation7], 32  }
0x1797   :  { %2026 = vsyncadd [#allocation7], 4294967264 }
0x1798   :  { %2027 = dma.done.wait [#allocation12], 32  }
0x1799   :  { %2028 = vsyncadd [#allocation12], 4294967264 }
0x179a   :  { %1518 = vsyncpa [#allocation6], 1 }
0x179b   :  { %1519 = vsyncpa [#allocation9], 1 }
0x179c   :  { %1520 = vsyncpa [#allocation7], 1 }
0x179d   :  { %1521 = vsyncpa [#allocation12], 1 }

</bundles_post_ra>
